<compile_context>
chip_gen: v6e
topology: v6e:2x2x1
jax: 0.10.0
libtpu: 0.0.40
codegen_flags: <defaults>
</compile_context>

<pallas_src>
import jax
import jax.numpy as jnp
from jax import lax
from jax.experimental import pallas as pl
from jax.experimental.pallas import tpu as pltpu


# --------------------------------------------------------------------------- #
# Fused kernel: deconv(2x2, stride 2) + concat + conv_3_1 (3x3 & 1x1 branches,
# InstanceNorm + ReLU each, summed).  One batch image per grid step.
#
# Every output pixel (2h+a, 2w+b) is addressed by its quadrant (a, b) and
# low-res position p = h*W + w.  In that frame the deconv is a plain matmul per
# quadrant and the 3x3 conv is, per output quadrant, 9 taps read from the 4
# quadrant images with spatial shifts in {-1,0,+1} realized as lane rolls plus
# boundary masks.
# --------------------------------------------------------------------------- #
def _make_kernel(H, W, Cin, Cout):
    P = H * W
    Ccat = 2 * Cout

    def kernel(x_ref, s_ref, wup_ref, wc_ref, m_ref, o_ref):
        # x_ref:   (1, Cin, P)        low-res input (channels in sublanes, spatial in lanes)
        # s_ref:   (1, 4, Cout, P)    skip, split into the 4 output quadrants
        # wup_ref: (4, Cout, Cin)     transp-conv weight per output quadrant (transposed)
        # wc_ref:  (9, 2*Cout, Ccat)  per-tap conv weight: rows = [3x3 branch ; 1x1 branch]
        # m_ref:   (4, P)             boundary masks: [row-, row+, col-, col+]
        # o_ref:   (1, 4, Cout, P)
        x = x_ref[0]                                                     # (Cin, P)
        masks = m_ref[...]                                               # (4, P)
        row_neg, row_pos = masks[0:1], masks[1:2]
        col_neg, col_pos = masks[2:3], masks[3:4]

        # --- transposed conv (k = stride = 2): one small matmul per quadrant ---
        # Quadrant extraction is by construction -> no lane slicing / relayout.
        cat = []
        for q in range(4):
            u_q = jnp.dot(wup_ref[q], x, preferred_element_type=jnp.float32)   # (Cout, P)
            cat.append(jnp.concatenate([u_q, s_ref[0, q]], axis=0))            # (Ccat, P)

        def shifted(src, qy, qx):
            # value at (h, w) = src[h + qy, w + qx]   (zero outside the image)
            s = qy * W + qx
            t = src if s == 0 else pltpu.roll(src, shift=(-s) % P, axis=1)
            if qy == -1:
                t = t * row_neg
            elif qy == 1:
                t = t * row_pos
            if qx == -1:
                t = t * col_neg
            elif qx == 1:
                t = t * col_pos
            return t

        # --- 3x3 conv (+ 1x1 branch folded onto the center tap) ---
        # 9 accumulated per-tap matmuls per output quadrant; no im2col operand is
        # ever materialized, shifted operands are consumed immediately.
        conv = []
        for a in (0, 1):
            for b in (0, 1):
                acc = None
                for dy in range(3):
                    qy, a2 = divmod(a + dy - 1, 2)        # floor semantics
                    for dx in range(3):
                        qx, b2 = divmod(b + dx - 1, 2)
                        t = shifted(cat[a2 * 2 + b2], qy, qx)
                        c = jnp.dot(wc_ref[dy * 3 + dx], t,
                                    preferred_element_type=jnp.float32)  # (2*Cout, P)
                        acc = c if acc is None else acc + c
                conv.append(acc)

        # --- InstanceNorm(affine=False) + ReLU per branch, centered two-pass stats ---
        n_pix = 4.0 * P
        mu = sum(jnp.sum(c, axis=-1, keepdims=True) for c in conv) / n_pix       # (2*Cout, 1)
        var = sum(jnp.sum((c - mu) * (c - mu), axis=-1, keepdims=True)
                  for c in conv) / n_pix
        inv = lax.rsqrt(var + 1e-5)
        for q in range(4):
            nrm = jnp.maximum((conv[q] - mu) * inv, 0.0)                         # (2*Cout, P)
            o_ref[0, q] = (nrm[:Cout] + nrm[Cout:]).astype(o_ref.dtype)

    return kernel


# --------------------------------------------------------------------------- #
# Full module forward (NCHW in / NCHW out, like the PyTorch module)
# --------------------------------------------------------------------------- #
def modified_unetr_up_block(inp_nchw, skip_nchw, w_up, w3, b3, w1, b1):
    # b3 / b1 accepted for API parity but dropped: bias before InstanceNorm
    # (affine=False) cancels exactly.
    del b3, b1
    N, Cin, H, W = inp_nchw.shape
    Cout = w_up.shape[1]
    Ccat = 2 * Cout
    H2, W2 = 2 * H, 2 * W
    P = H * W
    assert skip_nchw.shape == (N, Cout, H2, W2), skip_nchw.shape

    # --- layout prep (channels stay first; spatial flattened into the lane dim) ---
    x_flat = inp_nchw.reshape(N, Cin, P)                       # no transpose needed
    # skip split into the 4 output quadrants: [n, q=2a+b, c, h*W+w]
    # TODO(synk): fold this de-interleave (and the inverse output transpose) into the
    # surrounding model's layout to avoid two extra HBM passes.
    skip_q = jnp.transpose(
        skip_nchw.reshape(N, Cout, H, 2, W, 2), (0, 3, 5, 1, 2, 4)
    ).reshape(N, 4, Cout, P)

    # transp-conv weight (Cin, Cout, 2, 2) -> (4, Cout, Cin), quadrant-major, transposed
    wup_t = jnp.transpose(w_up, (2, 3, 1, 0)).reshape(4, Cout, Cin)
    # per-tap conv weight (9, 2*Cout, Ccat): top rows = 3x3 branch, bottom rows = 1x1
    # branch riding on the center tap (dy=dx=1 -> tap 4, zero shift).
    w3_t = jnp.transpose(w3, (0, 2, 1))                                   # (9, Cout, Ccat)
    w1_taps = jnp.zeros((9, Cout, Ccat), w1.dtype).at[4].set(w1.T)
    wc = jnp.concatenate([w3_t, w1_taps], axis=1)                         # (9, 2*Cout, Ccat)

    # boundary masks for the in-kernel shifted taps (hoisted constants)
    lane = jnp.arange(P, dtype=jnp.int32)
    col = lane % W
    masks = jnp.stack([
        (lane >= W).astype(jnp.float32),          # reading h-1 valid
        (lane < P - W).astype(jnp.float32),       # reading h+1 valid
        (col != 0).astype(jnp.float32),           # reading w-1 valid
        (col != W - 1).astype(jnp.float32),       # reading w+1 valid
    ])                                            # (4, P)

    flops_per_img = 2 * Cin * (4 * Cout) * P + 9 * 4 * 2 * (2 * Cout) * Ccat * P
    bytes_accessed = 4 * (x_flat.size + skip_q.size + wup_t.size + wc.size
                          + masks.size + N * 4 * Cout * P)

    out = pl.pallas_call(
        _make_kernel(H, W, Cin, Cout),
        out_shape=jax.ShapeDtypeStruct((N, 4, Cout, P), jnp.float32),
        grid=(N,),
        in_specs=[
            pl.BlockSpec((1, Cin, P), lambda n: (n, 0, 0)),
            pl.BlockSpec((1, 4, Cout, P), lambda n: (n, 0, 0, 0)),
            pl.BlockSpec((4, Cout, Cin), lambda n: (0, 0, 0)),
            pl.BlockSpec((9, 2 * Cout, Ccat), lambda n: (0, 0, 0)),
            pl.BlockSpec((4, P), lambda n: (0, 0)),
        ],
        out_specs=pl.BlockSpec((1, 4, Cout, P), lambda n: (n, 0, 0, 0)),
        compiler_params=pltpu.CompilerParams(
            dimension_semantics=("parallel",),
            vmem_limit_bytes=48 * 1024 * 1024),
        cost_estimate=pl.CostEstimate(
            flops=N * flops_per_img,
            transcendentals=N * 2 * Cout,
            bytes_accessed=bytes_accessed),
    )(x_flat, skip_q, wup_t, wc, masks)

    # quadrants -> NCHW (single output layout transpose; see TODO above)
    out = out.reshape(N, 2, 2, Cout, H, W)
    out = jnp.transpose(out, (0, 3, 4, 1, 5, 2)).reshape(N, Cout, H2, W2)
    return out


# --------------------------------------------------------------------------- #
# Pure-JAX reference (same math, no Pallas) for a correctness check.
# --------------------------------------------------------------------------- #
def reference(inp_nchw, skip_nchw, w_up, w3, b3, w1, b1):
    x = jnp.transpose(inp_nchw, (0, 2, 3, 1))
    s = jnp.transpose(skip_nchw, (0, 2, 3, 1))
    N, H, W, Cin = x.shape
    Cout = w_up.shape[1]
    up = jnp.einsum('nhwc,cokl->nhkwlo', x, w_up).reshape(N, 2 * H, 2 * W, Cout)
    cat = jnp.concatenate([up, s], axis=-1)
    H2, W2 = 2 * H, 2 * W
    xp = jnp.pad(cat, ((0, 0), (1, 1), (1, 1), (0, 0)))
    acc3 = jnp.zeros((N, H2, W2, Cout), jnp.float32)
    for dy in range(3):
        for dx in range(3):
            acc3 = acc3 + jnp.einsum('nhwc,co->nhwo',
                                     xp[:, dy:dy + H2, dx:dx + W2, :],
                                     w3[dy * 3 + dx])
    acc3 = acc3 + b3.reshape(1, 1, 1, Cout)
    acc1 = jnp.einsum('nhwc,co->nhwo', cat, w1) + b1.reshape(1, 1, 1, Cout)

    def inorm_relu(a):
        mu = jnp.mean(a, axis=(1, 2), keepdims=True)
        var = jnp.mean((a - mu) ** 2, axis=(1, 2), keepdims=True)
        return jnp.maximum((a - mu) * lax.rsqrt(var + 1e-5), 0.0)

    y = inorm_relu(acc3) + inorm_relu(acc1)
    return jnp.transpose(y, (0, 3, 1, 2))


if __name__ == "__main__":
    # small shapes: spatial_dims=2, in_channels=8, out_channels=4, upsample k=2
    N, Cin, H, W = 2, 8, 16, 16
    Cout = 4
    Ccat = 2 * Cout

    key = jax.random.PRNGKey(0)
    k1, k2, k3, k4, k5, k6, k7 = jax.random.split(key, 7)

    inp = jax.random.normal(k1, (N, Cin, H, W), jnp.float32)             # NCHW
    skip = jax.random.normal(k2, (N, Cout, 2 * H, 2 * W), jnp.float32)   # NCHW

    w_up = jax.random.normal(k3, (Cin, Cout, 2, 2), jnp.float32) * 0.1   # (Cin,Cout,kh,kw)
    w3 = jax.random.normal(k4, (9, Ccat, Cout), jnp.float32) * 0.1       # 3x3 conv taps
    b3 = jax.random.normal(k5, (1, Cout), jnp.float32) * 0.1
    w1 = jax.random.normal(k6, (Ccat, Cout), jnp.float32) * 0.1          # 1x1 conv
    b1 = jax.random.normal(k7, (1, Cout), jnp.float32) * 0.1

    out = modified_unetr_up_block(inp, skip, w_up, w3, b3, w1, b1)
    out = jax.block_until_ready(out)

    assert out.shape == (N, Cout, 2 * H, 2 * W), out.shape
    ref = reference(inp, skip, w_up, w3, b3, w1, b1)
    assert jnp.allclose(out, ref, atol=1e-3, rtol=1e-3), float(jnp.max(jnp.abs(out - ref)))

    print("KERNEL_OK")
</pallas_src>

<mosaic_0001>
module attributes {stable_mosaic.version = 11 : i64} {
  func.func @kernel(%arg0: i32, %arg1: memref<1x8x256xf32, #tpu.memory_space<vmem>>, %arg2: memref<1x4x4x256xf32, #tpu.memory_space<vmem>>, %arg3: memref<4x4x8xf32, #tpu.memory_space<vmem>>, %arg4: memref<9x8x8xf32, #tpu.memory_space<vmem>>, %arg5: memref<4x256xf32, #tpu.memory_space<vmem>>, %arg6: memref<1x4x4x256xf32, #tpu.memory_space<vmem>>) attributes {dimension_semantics = [#tpu.dimension_semantics<parallel>], iteration_bounds = array<i64: 2>, scalar_prefetch = 0 : i64, scratch_operands = 0 : i64, tpu.core_type = #tpu.core_type<tc>, window_params = [{transform_indices = @transform_0, window_bounds = array<i64: 1, 8, 256>}, {transform_indices = @transform_1, window_bounds = array<i64: 1, 4, 4, 256>}, {pipeline_mode = #tpu.pipeline_mode<synchronous>, transform_indices = @transform_2, window_bounds = array<i64: 4, 4, 8>}, {pipeline_mode = #tpu.pipeline_mode<synchronous>, transform_indices = @transform_3, window_bounds = array<i64: 9, 8, 8>}, {pipeline_mode = #tpu.pipeline_mode<synchronous>, transform_indices = @transform_4, window_bounds = array<i64: 4, 256>}, {transform_indices = @transform_5, window_bounds = array<i64: 1, 4, 4, 256>}]} {
    %c0 = arith.constant 0 : index
    %c0_0 = arith.constant 0 : index
    %c0_1 = arith.constant 0 : index
    %0 = vector.load %arg1[%c0, %c0_0, %c0_1] : memref<1x8x256xf32, #tpu.memory_space<vmem>>, vector<1x8x256xf32>
    %1 = vector.shape_cast %0 : vector<1x8x256xf32> to vector<8x256xf32>
    %c0_2 = arith.constant 0 : index
    %c0_3 = arith.constant 0 : index
    %2 = vector.load %arg5[%c0_2, %c0_3] : memref<4x256xf32, #tpu.memory_space<vmem>>, vector<4x256xf32>
    %3 = vector.extract_strided_slice %2 {offsets = [0, 0], sizes = [1, 256], strides = [1, 1]} : vector<4x256xf32> to vector<1x256xf32>
    %4 = vector.extract_strided_slice %2 {offsets = [1, 0], sizes = [1, 256], strides = [1, 1]} : vector<4x256xf32> to vector<1x256xf32>
    %5 = vector.extract_strided_slice %2 {offsets = [2, 0], sizes = [1, 256], strides = [1, 1]} : vector<4x256xf32> to vector<1x256xf32>
    %6 = vector.extract_strided_slice %2 {offsets = [3, 0], sizes = [1, 256], strides = [1, 1]} : vector<4x256xf32> to vector<1x256xf32>
    %c0_4 = arith.constant 0 : index
    %c0_5 = arith.constant 0 : index
    %c0_6 = arith.constant 0 : index
    %7 = vector.load %arg3[%c0_4, %c0_5, %c0_6] : memref<4x4x8xf32, #tpu.memory_space<vmem>>, vector<1x4x8xf32>
    %8 = vector.shape_cast %7 : vector<1x4x8xf32> to vector<4x8xf32>
    %cst = arith.constant dense<0.000000e+00> : vector<4x256xf32>
    %9 = tpu.matmul %8, %1, %cst {dimension_numbers = #tpu.dot_dimension_numbers<[1], [0], [0], [1], [0, 0, 1, 1], [], []>} : vector<4x8xf32>, vector<8x256xf32>, vector<4x256xf32> -> vector<4x256xf32>
    %c0_7 = arith.constant 0 : index
    %c0_8 = arith.constant 0 : index
    %c0_9 = arith.constant 0 : index
    %c0_10 = arith.constant 0 : index
    %10 = vector.load %arg2[%c0_7, %c0_8, %c0_9, %c0_10] : memref<1x4x4x256xf32, #tpu.memory_space<vmem>>, vector<1x1x4x256xf32>
    %11 = vector.shape_cast %10 : vector<1x1x4x256xf32> to vector<4x256xf32>
    %12 = tpu.concatenate %9, %11 in 0 : vector<4x256xf32>, vector<4x256xf32> -> vector<8x256xf32>
    %c1 = arith.constant 1 : index
    %c0_11 = arith.constant 0 : index
    %c0_12 = arith.constant 0 : index
    %13 = vector.load %arg3[%c1, %c0_11, %c0_12] : memref<4x4x8xf32, #tpu.memory_space<vmem>>, vector<1x4x8xf32>
    %14 = vector.shape_cast %13 : vector<1x4x8xf32> to vector<4x8xf32>
    %cst_13 = arith.constant dense<0.000000e+00> : vector<4x256xf32>
    %15 = tpu.matmul %14, %1, %cst_13 {dimension_numbers = #tpu.dot_dimension_numbers<[1], [0], [0], [1], [0, 0, 1, 1], [], []>} : vector<4x8xf32>, vector<8x256xf32>, vector<4x256xf32> -> vector<4x256xf32>
    %c0_14 = arith.constant 0 : index
    %c1_15 = arith.constant 1 : index
    %c0_16 = arith.constant 0 : index
    %c0_17 = arith.constant 0 : index
    %16 = vector.load %arg2[%c0_14, %c1_15, %c0_16, %c0_17] : memref<1x4x4x256xf32, #tpu.memory_space<vmem>>, vector<1x1x4x256xf32>
    %17 = vector.shape_cast %16 : vector<1x1x4x256xf32> to vector<4x256xf32>
    %18 = tpu.concatenate %15, %17 in 0 : vector<4x256xf32>, vector<4x256xf32> -> vector<8x256xf32>
    %c2 = arith.constant 2 : index
    %c0_18 = arith.constant 0 : index
    %c0_19 = arith.constant 0 : index
    %19 = vector.load %arg3[%c2, %c0_18, %c0_19] : memref<4x4x8xf32, #tpu.memory_space<vmem>>, vector<1x4x8xf32>
    %20 = vector.shape_cast %19 : vector<1x4x8xf32> to vector<4x8xf32>
    %cst_20 = arith.constant dense<0.000000e+00> : vector<4x256xf32>
    %21 = tpu.matmul %20, %1, %cst_20 {dimension_numbers = #tpu.dot_dimension_numbers<[1], [0], [0], [1], [0, 0, 1, 1], [], []>} : vector<4x8xf32>, vector<8x256xf32>, vector<4x256xf32> -> vector<4x256xf32>
    %c0_21 = arith.constant 0 : index
    %c2_22 = arith.constant 2 : index
    %c0_23 = arith.constant 0 : index
    %c0_24 = arith.constant 0 : index
    %22 = vector.load %arg2[%c0_21, %c2_22, %c0_23, %c0_24] : memref<1x4x4x256xf32, #tpu.memory_space<vmem>>, vector<1x1x4x256xf32>
    %23 = vector.shape_cast %22 : vector<1x1x4x256xf32> to vector<4x256xf32>
    %24 = tpu.concatenate %21, %23 in 0 : vector<4x256xf32>, vector<4x256xf32> -> vector<8x256xf32>
    %c3 = arith.constant 3 : index
    %c0_25 = arith.constant 0 : index
    %c0_26 = arith.constant 0 : index
    %25 = vector.load %arg3[%c3, %c0_25, %c0_26] : memref<4x4x8xf32, #tpu.memory_space<vmem>>, vector<1x4x8xf32>
    %26 = vector.shape_cast %25 : vector<1x4x8xf32> to vector<4x8xf32>
    %cst_27 = arith.constant dense<0.000000e+00> : vector<4x256xf32>
    %27 = tpu.matmul %26, %1, %cst_27 {dimension_numbers = #tpu.dot_dimension_numbers<[1], [0], [0], [1], [0, 0, 1, 1], [], []>} : vector<4x8xf32>, vector<8x256xf32>, vector<4x256xf32> -> vector<4x256xf32>
    %c0_28 = arith.constant 0 : index
    %c3_29 = arith.constant 3 : index
    %c0_30 = arith.constant 0 : index
    %c0_31 = arith.constant 0 : index
    %28 = vector.load %arg2[%c0_28, %c3_29, %c0_30, %c0_31] : memref<1x4x4x256xf32, #tpu.memory_space<vmem>>, vector<1x1x4x256xf32>
    %29 = vector.shape_cast %28 : vector<1x1x4x256xf32> to vector<4x256xf32>
    %30 = tpu.concatenate %27, %29 in 0 : vector<4x256xf32>, vector<4x256xf32> -> vector<8x256xf32>
    %c17_i32 = arith.constant 17 : i32
    %31 = tpu.dynamic_rotate %30 by %c17_i32 dim 1 : vector<8x256xf32>, i32 -> vector<8x256xf32>
    %32 = vector.broadcast %3 : vector<1x256xf32> to vector<8x256xf32>
    %33 = arith.mulf %31, %32 : vector<8x256xf32>
    %34 = vector.broadcast %5 : vector<1x256xf32> to vector<8x256xf32>
    %35 = arith.mulf %33, %34 : vector<8x256xf32>
    %c0_32 = arith.constant 0 : index
    %c0_33 = arith.constant 0 : index
    %c0_34 = arith.constant 0 : index
    %36 = vector.load %arg4[%c0_32, %c0_33, %c0_34] : memref<9x8x8xf32, #tpu.memory_space<vmem>>, vector<1x8x8xf32>
    %37 = vector.shape_cast %36 : vector<1x8x8xf32> to vector<8x8xf32>
    %cst_35 = arith.constant dense<0.000000e+00> : vector<8x256xf32>
    %38 = tpu.matmul %37, %35, %cst_35 {dimension_numbers = #tpu.dot_dimension_numbers<[1], [0], [0], [1], [0, 0, 1, 1], [], []>} : vector<8x8xf32>, vector<8x256xf32>, vector<8x256xf32> -> vector<8x256xf32>
    %c16_i32 = arith.constant 16 : i32
    %39 = tpu.dynamic_rotate %24 by %c16_i32 dim 1 : vector<8x256xf32>, i32 -> vector<8x256xf32>
    %40 = vector.broadcast %3 : vector<1x256xf32> to vector<8x256xf32>
    %41 = arith.mulf %39, %40 : vector<8x256xf32>
    %c1_36 = arith.constant 1 : index
    %c0_37 = arith.constant 0 : index
    %c0_38 = arith.constant 0 : index
    %42 = vector.load %arg4[%c1_36, %c0_37, %c0_38] : memref<9x8x8xf32, #tpu.memory_space<vmem>>, vector<1x8x8xf32>
    %43 = vector.shape_cast %42 : vector<1x8x8xf32> to vector<8x8xf32>
    %cst_39 = arith.constant dense<0.000000e+00> : vector<8x256xf32>
    %44 = tpu.matmul %43, %41, %cst_39 {dimension_numbers = #tpu.dot_dimension_numbers<[1], [0], [0], [1], [0, 0, 1, 1], [], []>} : vector<8x8xf32>, vector<8x256xf32>, vector<8x256xf32> -> vector<8x256xf32>
    %45 = arith.addf %38, %44 : vector<8x256xf32>
    %c16_i32_40 = arith.constant 16 : i32
    %46 = tpu.dynamic_rotate %30 by %c16_i32_40 dim 1 : vector<8x256xf32>, i32 -> vector<8x256xf32>
    %47 = vector.broadcast %3 : vector<1x256xf32> to vector<8x256xf32>
    %48 = arith.mulf %46, %47 : vector<8x256xf32>
    %c2_41 = arith.constant 2 : index
    %c0_42 = arith.constant 0 : index
    %c0_43 = arith.constant 0 : index
    %49 = vector.load %arg4[%c2_41, %c0_42, %c0_43] : memref<9x8x8xf32, #tpu.memory_space<vmem>>, vector<1x8x8xf32>
    %50 = vector.shape_cast %49 : vector<1x8x8xf32> to vector<8x8xf32>
    %cst_44 = arith.constant dense<0.000000e+00> : vector<8x256xf32>
    %51 = tpu.matmul %50, %48, %cst_44 {dimension_numbers = #tpu.dot_dimension_numbers<[1], [0], [0], [1], [0, 0, 1, 1], [], []>} : vector<8x8xf32>, vector<8x256xf32>, vector<8x256xf32> -> vector<8x256xf32>
    %52 = arith.addf %45, %51 : vector<8x256xf32>
    %c1_i32 = arith.constant 1 : i32
    %53 = tpu.dynamic_rotate %18 by %c1_i32 dim 1 : vector<8x256xf32>, i32 -> vector<8x256xf32>
    %54 = vector.broadcast %5 : vector<1x256xf32> to vector<8x256xf32>
    %55 = arith.mulf %53, %54 : vector<8x256xf32>
    %c3_45 = arith.constant 3 : index
    %c0_46 = arith.constant 0 : index
    %c0_47 = arith.constant 0 : index
    %56 = vector.load %arg4[%c3_45, %c0_46, %c0_47] : memref<9x8x8xf32, #tpu.memory_space<vmem>>, vector<1x8x8xf32>
    %57 = vector.shape_cast %56 : vector<1x8x8xf32> to vector<8x8xf32>
    %cst_48 = arith.constant dense<0.000000e+00> : vector<8x256xf32>
    %58 = tpu.matmul %57, %55, %cst_48 {dimension_numbers = #tpu.dot_dimension_numbers<[1], [0], [0], [1], [0, 0, 1, 1], [], []>} : vector<8x8xf32>, vector<8x256xf32>, vector<8x256xf32> -> vector<8x256xf32>
    %59 = arith.addf %52, %58 : vector<8x256xf32>
    %c4 = arith.constant 4 : index
    %c0_49 = arith.constant 0 : index
    %c0_50 = arith.constant 0 : index
    %60 = vector.load %arg4[%c4, %c0_49, %c0_50] : memref<9x8x8xf32, #tpu.memory_space<vmem>>, vector<1x8x8xf32>
    %61 = vector.shape_cast %60 : vector<1x8x8xf32> to vector<8x8xf32>
    %cst_51 = arith.constant dense<0.000000e+00> : vector<8x256xf32>
    %62 = tpu.matmul %61, %12, %cst_51 {dimension_numbers = #tpu.dot_dimension_numbers<[1], [0], [0], [1], [0, 0, 1, 1], [], []>} : vector<8x8xf32>, vector<8x256xf32>, vector<8x256xf32> -> vector<8x256xf32>
    %63 = arith.addf %59, %62 : vector<8x256xf32>
    %c5 = arith.constant 5 : index
    %c0_52 = arith.constant 0 : index
    %c0_53 = arith.constant 0 : index
    %64 = vector.load %arg4[%c5, %c0_52, %c0_53] : memref<9x8x8xf32, #tpu.memory_space<vmem>>, vector<1x8x8xf32>
    %65 = vector.shape_cast %64 : vector<1x8x8xf32> to vector<8x8xf32>
    %cst_54 = arith.constant dense<0.000000e+00> : vector<8x256xf32>
    %66 = tpu.matmul %65, %18, %cst_54 {dimension_numbers = #tpu.dot_dimension_numbers<[1], [0], [0], [1], [0, 0, 1, 1], [], []>} : vector<8x8xf32>, vector<8x256xf32>, vector<8x256xf32> -> vector<8x256xf32>
    %67 = arith.addf %63, %66 : vector<8x256xf32>
    %c1_i32_55 = arith.constant 1 : i32
    %68 = tpu.dynamic_rotate %30 by %c1_i32_55 dim 1 : vector<8x256xf32>, i32 -> vector<8x256xf32>
    %69 = vector.broadcast %5 : vector<1x256xf32> to vector<8x256xf32>
    %70 = arith.mulf %68, %69 : vector<8x256xf32>
    %c6 = arith.constant 6 : index
    %c0_56 = arith.constant 0 : index
    %c0_57 = arith.constant 0 : index
    %71 = vector.load %arg4[%c6, %c0_56, %c0_57] : memref<9x8x8xf32, #tpu.memory_space<vmem>>, vector<1x8x8xf32>
    %72 = vector.shape_cast %71 : vector<1x8x8xf32> to vector<8x8xf32>
    %cst_58 = arith.constant dense<0.000000e+00> : vector<8x256xf32>
    %73 = tpu.matmul %72, %70, %cst_58 {dimension_numbers = #tpu.dot_dimension_numbers<[1], [0], [0], [1], [0, 0, 1, 1], [], []>} : vector<8x8xf32>, vector<8x256xf32>, vector<8x256xf32> -> vector<8x256xf32>
    %74 = arith.addf %67, %73 : vector<8x256xf32>
    %c7 = arith.constant 7 : index
    %c0_59 = arith.constant 0 : index
    %c0_60 = arith.constant 0 : index
    %75 = vector.load %arg4[%c7, %c0_59, %c0_60] : memref<9x8x8xf32, #tpu.memory_space<vmem>>, vector<1x8x8xf32>
    %76 = vector.shape_cast %75 : vector<1x8x8xf32> to vector<8x8xf32>
    %cst_61 = arith.constant dense<0.000000e+00> : vector<8x256xf32>
    %77 = tpu.matmul %76, %24, %cst_61 {dimension_numbers = #tpu.dot_dimension_numbers<[1], [0], [0], [1], [0, 0, 1, 1], [], []>} : vector<8x8xf32>, vector<8x256xf32>, vector<8x256xf32> -> vector<8x256xf32>
    %78 = arith.addf %74, %77 : vector<8x256xf32>
    %c8 = arith.constant 8 : index
    %c0_62 = arith.constant 0 : index
    %c0_63 = arith.constant 0 : index
    %79 = vector.load %arg4[%c8, %c0_62, %c0_63] : memref<9x8x8xf32, #tpu.memory_space<vmem>>, vector<1x8x8xf32>
    %80 = vector.shape_cast %79 : vector<1x8x8xf32> to vector<8x8xf32>
    %cst_64 = arith.constant dense<0.000000e+00> : vector<8x256xf32>
    %81 = tpu.matmul %80, %30, %cst_64 {dimension_numbers = #tpu.dot_dimension_numbers<[1], [0], [0], [1], [0, 0, 1, 1], [], []>} : vector<8x8xf32>, vector<8x256xf32>, vector<8x256xf32> -> vector<8x256xf32>
    %82 = arith.addf %78, %81 : vector<8x256xf32>
    %c16_i32_65 = arith.constant 16 : i32
    %83 = tpu.dynamic_rotate %24 by %c16_i32_65 dim 1 : vector<8x256xf32>, i32 -> vector<8x256xf32>
    %84 = vector.broadcast %3 : vector<1x256xf32> to vector<8x256xf32>
    %85 = arith.mulf %83, %84 : vector<8x256xf32>
    %c0_66 = arith.constant 0 : index
    %c0_67 = arith.constant 0 : index
    %c0_68 = arith.constant 0 : index
    %86 = vector.load %arg4[%c0_66, %c0_67, %c0_68] : memref<9x8x8xf32, #tpu.memory_space<vmem>>, vector<1x8x8xf32>
    %87 = vector.shape_cast %86 : vector<1x8x8xf32> to vector<8x8xf32>
    %cst_69 = arith.constant dense<0.000000e+00> : vector<8x256xf32>
    %88 = tpu.matmul %87, %85, %cst_69 {dimension_numbers = #tpu.dot_dimension_numbers<[1], [0], [0], [1], [0, 0, 1, 1], [], []>} : vector<8x8xf32>, vector<8x256xf32>, vector<8x256xf32> -> vector<8x256xf32>
    %c16_i32_70 = arith.constant 16 : i32
    %89 = tpu.dynamic_rotate %30 by %c16_i32_70 dim 1 : vector<8x256xf32>, i32 -> vector<8x256xf32>
    %90 = vector.broadcast %3 : vector<1x256xf32> to vector<8x256xf32>
    %91 = arith.mulf %89, %90 : vector<8x256xf32>
    %c1_71 = arith.constant 1 : index
    %c0_72 = arith.constant 0 : index
    %c0_73 = arith.constant 0 : index
    %92 = vector.load %arg4[%c1_71, %c0_72, %c0_73] : memref<9x8x8xf32, #tpu.memory_space<vmem>>, vector<1x8x8xf32>
    %93 = vector.shape_cast %92 : vector<1x8x8xf32> to vector<8x8xf32>
    %cst_74 = arith.constant dense<0.000000e+00> : vector<8x256xf32>
    %94 = tpu.matmul %93, %91, %cst_74 {dimension_numbers = #tpu.dot_dimension_numbers<[1], [0], [0], [1], [0, 0, 1, 1], [], []>} : vector<8x8xf32>, vector<8x256xf32>, vector<8x256xf32> -> vector<8x256xf32>
    %95 = arith.addf %88, %94 : vector<8x256xf32>
    %c15_i32 = arith.constant 15 : i32
    %96 = tpu.dynamic_rotate %24 by %c15_i32 dim 1 : vector<8x256xf32>, i32 -> vector<8x256xf32>
    %97 = vector.broadcast %3 : vector<1x256xf32> to vector<8x256xf32>
    %98 = arith.mulf %96, %97 : vector<8x256xf32>
    %99 = vector.broadcast %6 : vector<1x256xf32> to vector<8x256xf32>
    %100 = arith.mulf %98, %99 : vector<8x256xf32>
    %c2_75 = arith.constant 2 : index
    %c0_76 = arith.constant 0 : index
    %c0_77 = arith.constant 0 : index
    %101 = vector.load %arg4[%c2_75, %c0_76, %c0_77] : memref<9x8x8xf32, #tpu.memory_space<vmem>>, vector<1x8x8xf32>
    %102 = vector.shape_cast %101 : vector<1x8x8xf32> to vector<8x8xf32>
    %cst_78 = arith.constant dense<0.000000e+00> : vector<8x256xf32>
    %103 = tpu.matmul %102, %100, %cst_78 {dimension_numbers = #tpu.dot_dimension_numbers<[1], [0], [0], [1], [0, 0, 1, 1], [], []>} : vector<8x8xf32>, vector<8x256xf32>, vector<8x256xf32> -> vector<8x256xf32>
    %104 = arith.addf %95, %103 : vector<8x256xf32>
    %c3_79 = arith.constant 3 : index
    %c0_80 = arith.constant 0 : index
    %c0_81 = arith.constant 0 : index
    %105 = vector.load %arg4[%c3_79, %c0_80, %c0_81] : memref<9x8x8xf32, #tpu.memory_space<vmem>>, vector<1x8x8xf32>
    %106 = vector.shape_cast %105 : vector<1x8x8xf32> to vector<8x8xf32>
    %cst_82 = arith.constant dense<0.000000e+00> : vector<8x256xf32>
    %107 = tpu.matmul %106, %12, %cst_82 {dimension_numbers = #tpu.dot_dimension_numbers<[1], [0], [0], [1], [0, 0, 1, 1], [], []>} : vector<8x8xf32>, vector<8x256xf32>, vector<8x256xf32> -> vector<8x256xf32>
    %108 = arith.addf %104, %107 : vector<8x256xf32>
    %c4_83 = arith.constant 4 : index
    %c0_84 = arith.constant 0 : index
    %c0_85 = arith.constant 0 : index
    %109 = vector.load %arg4[%c4_83, %c0_84, %c0_85] : memref<9x8x8xf32, #tpu.memory_space<vmem>>, vector<1x8x8xf32>
    %110 = vector.shape_cast %109 : vector<1x8x8xf32> to vector<8x8xf32>
    %cst_86 = arith.constant dense<0.000000e+00> : vector<8x256xf32>
    %111 = tpu.matmul %110, %18, %cst_86 {dimension_numbers = #tpu.dot_dimension_numbers<[1], [0], [0], [1], [0, 0, 1, 1], [], []>} : vector<8x8xf32>, vector<8x256xf32>, vector<8x256xf32> -> vector<8x256xf32>
    %112 = arith.addf %108, %111 : vector<8x256xf32>
    %c255_i32 = arith.constant 255 : i32
    %113 = tpu.dynamic_rotate %12 by %c255_i32 dim 1 : vector<8x256xf32>, i32 -> vector<8x256xf32>
    %114 = vector.broadcast %6 : vector<1x256xf32> to vector<8x256xf32>
    %115 = arith.mulf %113, %114 : vector<8x256xf32>
    %c5_87 = arith.constant 5 : index
    %c0_88 = arith.constant 0 : index
    %c0_89 = arith.constant 0 : index
    %116 = vector.load %arg4[%c5_87, %c0_88, %c0_89] : memref<9x8x8xf32, #tpu.memory_space<vmem>>, vector<1x8x8xf32>
    %117 = vector.shape_cast %116 : vector<1x8x8xf32> to vector<8x8xf32>
    %cst_90 = arith.constant dense<0.000000e+00> : vector<8x256xf32>
    %118 = tpu.matmul %117, %115, %cst_90 {dimension_numbers = #tpu.dot_dimension_numbers<[1], [0], [0], [1], [0, 0, 1, 1], [], []>} : vector<8x8xf32>, vector<8x256xf32>, vector<8x256xf32> -> vector<8x256xf32>
    %119 = arith.addf %112, %118 : vector<8x256xf32>
    %c6_91 = arith.constant 6 : index
    %c0_92 = arith.constant 0 : index
    %c0_93 = arith.constant 0 : index
    %120 = vector.load %arg4[%c6_91, %c0_92, %c0_93] : memref<9x8x8xf32, #tpu.memory_space<vmem>>, vector<1x8x8xf32>
    %121 = vector.shape_cast %120 : vector<1x8x8xf32> to vector<8x8xf32>
    %cst_94 = arith.constant dense<0.000000e+00> : vector<8x256xf32>
    %122 = tpu.matmul %121, %24, %cst_94 {dimension_numbers = #tpu.dot_dimension_numbers<[1], [0], [0], [1], [0, 0, 1, 1], [], []>} : vector<8x8xf32>, vector<8x256xf32>, vector<8x256xf32> -> vector<8x256xf32>
    %123 = arith.addf %119, %122 : vector<8x256xf32>
    %c7_95 = arith.constant 7 : index
    %c0_96 = arith.constant 0 : index
    %c0_97 = arith.constant 0 : index
    %124 = vector.load %arg4[%c7_95, %c0_96, %c0_97] : memref<9x8x8xf32, #tpu.memory_space<vmem>>, vector<1x8x8xf32>
    %125 = vector.shape_cast %124 : vector<1x8x8xf32> to vector<8x8xf32>
    %cst_98 = arith.constant dense<0.000000e+00> : vector<8x256xf32>
    %126 = tpu.matmul %125, %30, %cst_98 {dimension_numbers = #tpu.dot_dimension_numbers<[1], [0], [0], [1], [0, 0, 1, 1], [], []>} : vector<8x8xf32>, vector<8x256xf32>, vector<8x256xf32> -> vector<8x256xf32>
    %127 = arith.addf %123, %126 : vector<8x256xf32>
    %c255_i32_99 = arith.constant 255 : i32
    %128 = tpu.dynamic_rotate %24 by %c255_i32_99 dim 1 : vector<8x256xf32>, i32 -> vector<8x256xf32>
    %129 = vector.broadcast %6 : vector<1x256xf32> to vector<8x256xf32>
    %130 = arith.mulf %128, %129 : vector<8x256xf32>
    %c8_100 = arith.constant 8 : index
    %c0_101 = arith.constant 0 : index
    %c0_102 = arith.constant 0 : index
    %131 = vector.load %arg4[%c8_100, %c0_101, %c0_102] : memref<9x8x8xf32, #tpu.memory_space<vmem>>, vector<1x8x8xf32>
    %132 = vector.shape_cast %131 : vector<1x8x8xf32> to vector<8x8xf32>
    %cst_103 = arith.constant dense<0.000000e+00> : vector<8x256xf32>
    %133 = tpu.matmul %132, %130, %cst_103 {dimension_numbers = #tpu.dot_dimension_numbers<[1], [0], [0], [1], [0, 0, 1, 1], [], []>} : vector<8x8xf32>, vector<8x256xf32>, vector<8x256xf32> -> vector<8x256xf32>
    %134 = arith.addf %127, %133 : vector<8x256xf32>
    %c1_i32_104 = arith.constant 1 : i32
    %135 = tpu.dynamic_rotate %18 by %c1_i32_104 dim 1 : vector<8x256xf32>, i32 -> vector<8x256xf32>
    %136 = vector.broadcast %5 : vector<1x256xf32> to vector<8x256xf32>
    %137 = arith.mulf %135, %136 : vector<8x256xf32>
    %c0_105 = arith.constant 0 : index
    %c0_106 = arith.constant 0 : index
    %c0_107 = arith.constant 0 : index
    %138 = vector.load %arg4[%c0_105, %c0_106, %c0_107] : memref<9x8x8xf32, #tpu.memory_space<vmem>>, vector<1x8x8xf32>
    %139 = vector.shape_cast %138 : vector<1x8x8xf32> to vector<8x8xf32>
    %cst_108 = arith.constant dense<0.000000e+00> : vector<8x256xf32>
    %140 = tpu.matmul %139, %137, %cst_108 {dimension_numbers = #tpu.dot_dimension_numbers<[1], [0], [0], [1], [0, 0, 1, 1], [], []>} : vector<8x8xf32>, vector<8x256xf32>, vector<8x256xf32> -> vector<8x256xf32>
    %c1_109 = arith.constant 1 : index
    %c0_110 = arith.constant 0 : index
    %c0_111 = arith.constant 0 : index
    %141 = vector.load %arg4[%c1_109, %c0_110, %c0_111] : memref<9x8x8xf32, #tpu.memory_space<vmem>>, vector<1x8x8xf32>
    %142 = vector.shape_cast %141 : vector<1x8x8xf32> to vector<8x8xf32>
    %cst_112 = arith.constant dense<0.000000e+00> : vector<8x256xf32>
    %143 = tpu.matmul %142, %12, %cst_112 {dimension_numbers = #tpu.dot_dimension_numbers<[1], [0], [0], [1], [0, 0, 1, 1], [], []>} : vector<8x8xf32>, vector<8x256xf32>, vector<8x256xf32> -> vector<8x256xf32>
    %144 = arith.addf %140, %143 : vector<8x256xf32>
    %c2_113 = arith.constant 2 : index
    %c0_114 = arith.constant 0 : index
    %c0_115 = arith.constant 0 : index
    %145 = vector.load %arg4[%c2_113, %c0_114, %c0_115] : memref<9x8x8xf32, #tpu.memory_space<vmem>>, vector<1x8x8xf32>
    %146 = vector.shape_cast %145 : vector<1x8x8xf32> to vector<8x8xf32>
    %cst_116 = arith.constant dense<0.000000e+00> : vector<8x256xf32>
    %147 = tpu.matmul %146, %18, %cst_116 {dimension_numbers = #tpu.dot_dimension_numbers<[1], [0], [0], [1], [0, 0, 1, 1], [], []>} : vector<8x8xf32>, vector<8x256xf32>, vector<8x256xf32> -> vector<8x256xf32>
    %148 = arith.addf %144, %147 : vector<8x256xf32>
    %c1_i32_117 = arith.constant 1 : i32
    %149 = tpu.dynamic_rotate %30 by %c1_i32_117 dim 1 : vector<8x256xf32>, i32 -> vector<8x256xf32>
    %150 = vector.broadcast %5 : vector<1x256xf32> to vector<8x256xf32>
    %151 = arith.mulf %149, %150 : vector<8x256xf32>
    %c3_118 = arith.constant 3 : index
    %c0_119 = arith.constant 0 : index
    %c0_120 = arith.constant 0 : index
    %152 = vector.load %arg4[%c3_118, %c0_119, %c0_120] : memref<9x8x8xf32, #tpu.memory_space<vmem>>, vector<1x8x8xf32>
    %153 = vector.shape_cast %152 : vector<1x8x8xf32> to vector<8x8xf32>
    %cst_121 = arith.constant dense<0.000000e+00> : vector<8x256xf32>
    %154 = tpu.matmul %153, %151, %cst_121 {dimension_numbers = #tpu.dot_dimension_numbers<[1], [0], [0], [1], [0, 0, 1, 1], [], []>} : vector<8x8xf32>, vector<8x256xf32>, vector<8x256xf32> -> vector<8x256xf32>
    %155 = arith.addf %148, %154 : vector<8x256xf32>
    %c4_122 = arith.constant 4 : index
    %c0_123 = arith.constant 0 : index
    %c0_124 = arith.constant 0 : index
    %156 = vector.load %arg4[%c4_122, %c0_123, %c0_124] : memref<9x8x8xf32, #tpu.memory_space<vmem>>, vector<1x8x8xf32>
    %157 = vector.shape_cast %156 : vector<1x8x8xf32> to vector<8x8xf32>
    %cst_125 = arith.constant dense<0.000000e+00> : vector<8x256xf32>
    %158 = tpu.matmul %157, %24, %cst_125 {dimension_numbers = #tpu.dot_dimension_numbers<[1], [0], [0], [1], [0, 0, 1, 1], [], []>} : vector<8x8xf32>, vector<8x256xf32>, vector<8x256xf32> -> vector<8x256xf32>
    %159 = arith.addf %155, %158 : vector<8x256xf32>
    %c5_126 = arith.constant 5 : index
    %c0_127 = arith.constant 0 : index
    %c0_128 = arith.constant 0 : index
    %160 = vector.load %arg4[%c5_126, %c0_127, %c0_128] : memref<9x8x8xf32, #tpu.memory_space<vmem>>, vector<1x8x8xf32>
    %161 = vector.shape_cast %160 : vector<1x8x8xf32> to vector<8x8xf32>
    %cst_129 = arith.constant dense<0.000000e+00> : vector<8x256xf32>
    %162 = tpu.matmul %161, %30, %cst_129 {dimension_numbers = #tpu.dot_dimension_numbers<[1], [0], [0], [1], [0, 0, 1, 1], [], []>} : vector<8x8xf32>, vector<8x256xf32>, vector<8x256xf32> -> vector<8x256xf32>
    %163 = arith.addf %159, %162 : vector<8x256xf32>
    %c241_i32 = arith.constant 241 : i32
    %164 = tpu.dynamic_rotate %18 by %c241_i32 dim 1 : vector<8x256xf32>, i32 -> vector<8x256xf32>
    %165 = vector.broadcast %4 : vector<1x256xf32> to vector<8x256xf32>
    %166 = arith.mulf %164, %165 : vector<8x256xf32>
    %167 = vector.broadcast %5 : vector<1x256xf32> to vector<8x256xf32>
    %168 = arith.mulf %166, %167 : vector<8x256xf32>
    %c6_130 = arith.constant 6 : index
    %c0_131 = arith.constant 0 : index
    %c0_132 = arith.constant 0 : index
    %169 = vector.load %arg4[%c6_130, %c0_131, %c0_132] : memref<9x8x8xf32, #tpu.memory_space<vmem>>, vector<1x8x8xf32>
    %170 = vector.shape_cast %169 : vector<1x8x8xf32> to vector<8x8xf32>
    %cst_133 = arith.constant dense<0.000000e+00> : vector<8x256xf32>
    %171 = tpu.matmul %170, %168, %cst_133 {dimension_numbers = #tpu.dot_dimension_numbers<[1], [0], [0], [1], [0, 0, 1, 1], [], []>} : vector<8x8xf32>, vector<8x256xf32>, vector<8x256xf32> -> vector<8x256xf32>
    %172 = arith.addf %163, %171 : vector<8x256xf32>
    %c240_i32 = arith.constant 240 : i32
    %173 = tpu.dynamic_rotate %12 by %c240_i32 dim 1 : vector<8x256xf32>, i32 -> vector<8x256xf32>
    %174 = vector.broadcast %4 : vector<1x256xf32> to vector<8x256xf32>
    %175 = arith.mulf %173, %174 : vector<8x256xf32>
    %c7_134 = arith.constant 7 : index
    %c0_135 = arith.constant 0 : index
    %c0_136 = arith.constant 0 : index
    %176 = vector.load %arg4[%c7_134, %c0_135, %c0_136] : memref<9x8x8xf32, #tpu.memory_space<vmem>>, vector<1x8x8xf32>
    %177 = vector.shape_cast %176 : vector<1x8x8xf32> to vector<8x8xf32>
    %cst_137 = arith.constant dense<0.000000e+00> : vector<8x256xf32>
    %178 = tpu.matmul %177, %175, %cst_137 {dimension_numbers = #tpu.dot_dimension_numbers<[1], [0], [0], [1], [0, 0, 1, 1], [], []>} : vector<8x8xf32>, vector<8x256xf32>, vector<8x256xf32> -> vector<8x256xf32>
    %179 = arith.addf %172, %178 : vector<8x256xf32>
    %c240_i32_138 = arith.constant 240 : i32
    %180 = tpu.dynamic_rotate %18 by %c240_i32_138 dim 1 : vector<8x256xf32>, i32 -> vector<8x256xf32>
    %181 = vector.broadcast %4 : vector<1x256xf32> to vector<8x256xf32>
    %182 = arith.mulf %180, %181 : vector<8x256xf32>
    %c8_139 = arith.constant 8 : index
    %c0_140 = arith.constant 0 : index
    %c0_141 = arith.constant 0 : index
    %183 = vector.load %arg4[%c8_139, %c0_140, %c0_141] : memref<9x8x8xf32, #tpu.memory_space<vmem>>, vector<1x8x8xf32>
    %184 = vector.shape_cast %183 : vector<1x8x8xf32> to vector<8x8xf32>
    %cst_142 = arith.constant dense<0.000000e+00> : vector<8x256xf32>
    %185 = tpu.matmul %184, %182, %cst_142 {dimension_numbers = #tpu.dot_dimension_numbers<[1], [0], [0], [1], [0, 0, 1, 1], [], []>} : vector<8x8xf32>, vector<8x256xf32>, vector<8x256xf32> -> vector<8x256xf32>
    %186 = arith.addf %179, %185 : vector<8x256xf32>
    %c0_143 = arith.constant 0 : index
    %c0_144 = arith.constant 0 : index
    %c0_145 = arith.constant 0 : index
    %187 = vector.load %arg4[%c0_143, %c0_144, %c0_145] : memref<9x8x8xf32, #tpu.memory_space<vmem>>, vector<1x8x8xf32>
    %188 = vector.shape_cast %187 : vector<1x8x8xf32> to vector<8x8xf32>
    %cst_146 = arith.constant dense<0.000000e+00> : vector<8x256xf32>
    %189 = tpu.matmul %188, %12, %cst_146 {dimension_numbers = #tpu.dot_dimension_numbers<[1], [0], [0], [1], [0, 0, 1, 1], [], []>} : vector<8x8xf32>, vector<8x256xf32>, vector<8x256xf32> -> vector<8x256xf32>
    %c1_147 = arith.constant 1 : index
    %c0_148 = arith.constant 0 : index
    %c0_149 = arith.constant 0 : index
    %190 = vector.load %arg4[%c1_147, %c0_148, %c0_149] : memref<9x8x8xf32, #tpu.memory_space<vmem>>, vector<1x8x8xf32>
    %191 = vector.shape_cast %190 : vector<1x8x8xf32> to vector<8x8xf32>
    %cst_150 = arith.constant dense<0.000000e+00> : vector<8x256xf32>
    %192 = tpu.matmul %191, %18, %cst_150 {dimension_numbers = #tpu.dot_dimension_numbers<[1], [0], [0], [1], [0, 0, 1, 1], [], []>} : vector<8x8xf32>, vector<8x256xf32>, vector<8x256xf32> -> vector<8x256xf32>
    %193 = arith.addf %189, %192 : vector<8x256xf32>
    %c255_i32_151 = arith.constant 255 : i32
    %194 = tpu.dynamic_rotate %12 by %c255_i32_151 dim 1 : vector<8x256xf32>, i32 -> vector<8x256xf32>
    %195 = vector.broadcast %6 : vector<1x256xf32> to vector<8x256xf32>
    %196 = arith.mulf %194, %195 : vector<8x256xf32>
    %c2_152 = arith.constant 2 : index
    %c0_153 = arith.constant 0 : index
    %c0_154 = arith.constant 0 : index
    %197 = vector.load %arg4[%c2_152, %c0_153, %c0_154] : memref<9x8x8xf32, #tpu.memory_space<vmem>>, vector<1x8x8xf32>
    %198 = vector.shape_cast %197 : vector<1x8x8xf32> to vector<8x8xf32>
    %cst_155 = arith.constant dense<0.000000e+00> : vector<8x256xf32>
    %199 = tpu.matmul %198, %196, %cst_155 {dimension_numbers = #tpu.dot_dimension_numbers<[1], [0], [0], [1], [0, 0, 1, 1], [], []>} : vector<8x8xf32>, vector<8x256xf32>, vector<8x256xf32> -> vector<8x256xf32>
    %200 = arith.addf %193, %199 : vector<8x256xf32>
    %c3_156 = arith.constant 3 : index
    %c0_157 = arith.constant 0 : index
    %c0_158 = arith.constant 0 : index
    %201 = vector.load %arg4[%c3_156, %c0_157, %c0_158] : memref<9x8x8xf32, #tpu.memory_space<vmem>>, vector<1x8x8xf32>
    %202 = vector.shape_cast %201 : vector<1x8x8xf32> to vector<8x8xf32>
    %cst_159 = arith.constant dense<0.000000e+00> : vector<8x256xf32>
    %203 = tpu.matmul %202, %24, %cst_159 {dimension_numbers = #tpu.dot_dimension_numbers<[1], [0], [0], [1], [0, 0, 1, 1], [], []>} : vector<8x8xf32>, vector<8x256xf32>, vector<8x256xf32> -> vector<8x256xf32>
    %204 = arith.addf %200, %203 : vector<8x256xf32>
    %c4_160 = arith.constant 4 : index
    %c0_161 = arith.constant 0 : index
    %c0_162 = arith.constant 0 : index
    %205 = vector.load %arg4[%c4_160, %c0_161, %c0_162] : memref<9x8x8xf32, #tpu.memory_space<vmem>>, vector<1x8x8xf32>
    %206 = vector.shape_cast %205 : vector<1x8x8xf32> to vector<8x8xf32>
    %cst_163 = arith.constant dense<0.000000e+00> : vector<8x256xf32>
    %207 = tpu.matmul %206, %30, %cst_163 {dimension_numbers = #tpu.dot_dimension_numbers<[1], [0], [0], [1], [0, 0, 1, 1], [], []>} : vector<8x8xf32>, vector<8x256xf32>, vector<8x256xf32> -> vector<8x256xf32>
    %208 = arith.addf %204, %207 : vector<8x256xf32>
    %c255_i32_164 = arith.constant 255 : i32
    %209 = tpu.dynamic_rotate %24 by %c255_i32_164 dim 1 : vector<8x256xf32>, i32 -> vector<8x256xf32>
    %210 = vector.broadcast %6 : vector<1x256xf32> to vector<8x256xf32>
    %211 = arith.mulf %209, %210 : vector<8x256xf32>
    %c5_165 = arith.constant 5 : index
    %c0_166 = arith.constant 0 : index
    %c0_167 = arith.constant 0 : index
    %212 = vector.load %arg4[%c5_165, %c0_166, %c0_167] : memref<9x8x8xf32, #tpu.memory_space<vmem>>, vector<1x8x8xf32>
    %213 = vector.shape_cast %212 : vector<1x8x8xf32> to vector<8x8xf32>
    %cst_168 = arith.constant dense<0.000000e+00> : vector<8x256xf32>
    %214 = tpu.matmul %213, %211, %cst_168 {dimension_numbers = #tpu.dot_dimension_numbers<[1], [0], [0], [1], [0, 0, 1, 1], [], []>} : vector<8x8xf32>, vector<8x256xf32>, vector<8x256xf32> -> vector<8x256xf32>
    %215 = arith.addf %208, %214 : vector<8x256xf32>
    %c240_i32_169 = arith.constant 240 : i32
    %216 = tpu.dynamic_rotate %12 by %c240_i32_169 dim 1 : vector<8x256xf32>, i32 -> vector<8x256xf32>
    %217 = vector.broadcast %4 : vector<1x256xf32> to vector<8x256xf32>
    %218 = arith.mulf %216, %217 : vector<8x256xf32>
    %c6_170 = arith.constant 6 : index
    %c0_171 = arith.constant 0 : index
    %c0_172 = arith.constant 0 : index
    %219 = vector.load %arg4[%c6_170, %c0_171, %c0_172] : memref<9x8x8xf32, #tpu.memory_space<vmem>>, vector<1x8x8xf32>
    %220 = vector.shape_cast %219 : vector<1x8x8xf32> to vector<8x8xf32>
    %cst_173 = arith.constant dense<0.000000e+00> : vector<8x256xf32>
    %221 = tpu.matmul %220, %218, %cst_173 {dimension_numbers = #tpu.dot_dimension_numbers<[1], [0], [0], [1], [0, 0, 1, 1], [], []>} : vector<8x8xf32>, vector<8x256xf32>, vector<8x256xf32> -> vector<8x256xf32>
    %222 = arith.addf %215, %221 : vector<8x256xf32>
    %c240_i32_174 = arith.constant 240 : i32
    %223 = tpu.dynamic_rotate %18 by %c240_i32_174 dim 1 : vector<8x256xf32>, i32 -> vector<8x256xf32>
    %224 = vector.broadcast %4 : vector<1x256xf32> to vector<8x256xf32>
    %225 = arith.mulf %223, %224 : vector<8x256xf32>
    %c7_175 = arith.constant 7 : index
    %c0_176 = arith.constant 0 : index
    %c0_177 = arith.constant 0 : index
    %226 = vector.load %arg4[%c7_175, %c0_176, %c0_177] : memref<9x8x8xf32, #tpu.memory_space<vmem>>, vector<1x8x8xf32>
    %227 = vector.shape_cast %226 : vector<1x8x8xf32> to vector<8x8xf32>
    %cst_178 = arith.constant dense<0.000000e+00> : vector<8x256xf32>
    %228 = tpu.matmul %227, %225, %cst_178 {dimension_numbers = #tpu.dot_dimension_numbers<[1], [0], [0], [1], [0, 0, 1, 1], [], []>} : vector<8x8xf32>, vector<8x256xf32>, vector<8x256xf32> -> vector<8x256xf32>
    %229 = arith.addf %222, %228 : vector<8x256xf32>
    %c239_i32 = arith.constant 239 : i32
    %230 = tpu.dynamic_rotate %12 by %c239_i32 dim 1 : vector<8x256xf32>, i32 -> vector<8x256xf32>
    %231 = vector.broadcast %4 : vector<1x256xf32> to vector<8x256xf32>
    %232 = arith.mulf %230, %231 : vector<8x256xf32>
    %233 = vector.broadcast %6 : vector<1x256xf32> to vector<8x256xf32>
    %234 = arith.mulf %232, %233 : vector<8x256xf32>
    %c8_179 = arith.constant 8 : index
    %c0_180 = arith.constant 0 : index
    %c0_181 = arith.constant 0 : index
    %235 = vector.load %arg4[%c8_179, %c0_180, %c0_181] : memref<9x8x8xf32, #tpu.memory_space<vmem>>, vector<1x8x8xf32>
    %236 = vector.shape_cast %235 : vector<1x8x8xf32> to vector<8x8xf32>
    %cst_182 = arith.constant dense<0.000000e+00> : vector<8x256xf32>
    %237 = tpu.matmul %236, %234, %cst_182 {dimension_numbers = #tpu.dot_dimension_numbers<[1], [0], [0], [1], [0, 0, 1, 1], [], []>} : vector<8x8xf32>, vector<8x256xf32>, vector<8x256xf32> -> vector<8x256xf32>
    %238 = arith.addf %229, %237 : vector<8x256xf32>
    %cst_183 = arith.constant dense<0.000000e+00> : vector<8xf32>
    %239 = vector.multi_reduction <add>, %82, %cst_183 [1] : vector<8x256xf32> to vector<8xf32>
    %240 = vector.shape_cast %239 : vector<8xf32> to vector<8x1xf32>
    %cst_184 = arith.constant 0.000000e+00 : f32
    %241 = vector.broadcast %cst_184 : f32 to vector<8x1xf32>
    %242 = arith.addf %241, %240 : vector<8x1xf32>
    %cst_185 = arith.constant dense<0.000000e+00> : vector<8xf32>
    %243 = vector.multi_reduction <add>, %134, %cst_185 [1] : vector<8x256xf32> to vector<8xf32>
    %244 = vector.shape_cast %243 : vector<8xf32> to vector<8x1xf32>
    %245 = arith.addf %242, %244 : vector<8x1xf32>
    %cst_186 = arith.constant dense<0.000000e+00> : vector<8xf32>
    %246 = vector.multi_reduction <add>, %186, %cst_186 [1] : vector<8x256xf32> to vector<8xf32>
    %247 = vector.shape_cast %246 : vector<8xf32> to vector<8x1xf32>
    %248 = arith.addf %245, %247 : vector<8x1xf32>
    %cst_187 = arith.constant dense<0.000000e+00> : vector<8xf32>
    %249 = vector.multi_reduction <add>, %238, %cst_187 [1] : vector<8x256xf32> to vector<8xf32>
    %250 = vector.shape_cast %249 : vector<8xf32> to vector<8x1xf32>
    %251 = arith.addf %248, %250 : vector<8x1xf32>
    %cst_188 = arith.constant 1.024000e+03 : f32
    %252 = vector.broadcast %cst_188 : f32 to vector<8x1xf32>
    %253 = arith.divf %251, %252 : vector<8x1xf32>
    %254 = vector.broadcast %253 : vector<8x1xf32> to vector<8x256xf32>
    %255 = arith.subf %82, %254 : vector<8x256xf32>
    %256 = vector.broadcast %253 : vector<8x1xf32> to vector<8x256xf32>
    %257 = arith.subf %82, %256 : vector<8x256xf32>
    %258 = arith.mulf %255, %257 : vector<8x256xf32>
    %cst_189 = arith.constant dense<0.000000e+00> : vector<8xf32>
    %259 = vector.multi_reduction <add>, %258, %cst_189 [1] : vector<8x256xf32> to vector<8xf32>
    %260 = vector.shape_cast %259 : vector<8xf32> to vector<8x1xf32>
    %cst_190 = arith.constant 0.000000e+00 : f32
    %261 = vector.broadcast %cst_190 : f32 to vector<8x1xf32>
    %262 = arith.addf %261, %260 : vector<8x1xf32>
    %263 = vector.broadcast %253 : vector<8x1xf32> to vector<8x256xf32>
    %264 = arith.subf %134, %263 : vector<8x256xf32>
    %265 = vector.broadcast %253 : vector<8x1xf32> to vector<8x256xf32>
    %266 = arith.subf %134, %265 : vector<8x256xf32>
    %267 = arith.mulf %264, %266 : vector<8x256xf32>
    %cst_191 = arith.constant dense<0.000000e+00> : vector<8xf32>
    %268 = vector.multi_reduction <add>, %267, %cst_191 [1] : vector<8x256xf32> to vector<8xf32>
    %269 = vector.shape_cast %268 : vector<8xf32> to vector<8x1xf32>
    %270 = arith.addf %262, %269 : vector<8x1xf32>
    %271 = vector.broadcast %253 : vector<8x1xf32> to vector<8x256xf32>
    %272 = arith.subf %186, %271 : vector<8x256xf32>
    %273 = vector.broadcast %253 : vector<8x1xf32> to vector<8x256xf32>
    %274 = arith.subf %186, %273 : vector<8x256xf32>
    %275 = arith.mulf %272, %274 : vector<8x256xf32>
    %cst_192 = arith.constant dense<0.000000e+00> : vector<8xf32>
    %276 = vector.multi_reduction <add>, %275, %cst_192 [1] : vector<8x256xf32> to vector<8xf32>
    %277 = vector.shape_cast %276 : vector<8xf32> to vector<8x1xf32>
    %278 = arith.addf %270, %277 : vector<8x1xf32>
    %279 = vector.broadcast %253 : vector<8x1xf32> to vector<8x256xf32>
    %280 = arith.subf %238, %279 : vector<8x256xf32>
    %281 = vector.broadcast %253 : vector<8x1xf32> to vector<8x256xf32>
    %282 = arith.subf %238, %281 : vector<8x256xf32>
    %283 = arith.mulf %280, %282 : vector<8x256xf32>
    %cst_193 = arith.constant dense<0.000000e+00> : vector<8xf32>
    %284 = vector.multi_reduction <add>, %283, %cst_193 [1] : vector<8x256xf32> to vector<8xf32>
    %285 = vector.shape_cast %284 : vector<8xf32> to vector<8x1xf32>
    %286 = arith.addf %278, %285 : vector<8x1xf32>
    %cst_194 = arith.constant 1.024000e+03 : f32
    %287 = vector.broadcast %cst_194 : f32 to vector<8x1xf32>
    %288 = arith.divf %286, %287 : vector<8x1xf32>
    %cst_195 = arith.constant 9.99999974E-6 : f32
    %289 = vector.broadcast %cst_195 : f32 to vector<8x1xf32>
    %290 = arith.addf %288, %289 : vector<8x1xf32>
    %291 = math.rsqrt %290 : vector<8x1xf32>
    %292 = vector.broadcast %253 : vector<8x1xf32> to vector<8x256xf32>
    %293 = arith.subf %82, %292 : vector<8x256xf32>
    %294 = vector.broadcast %291 : vector<8x1xf32> to vector<8x256xf32>
    %295 = arith.mulf %293, %294 : vector<8x256xf32>
    %cst_196 = arith.constant 0.000000e+00 : f32
    %296 = vector.broadcast %cst_196 : f32 to vector<8x256xf32>
    %297 = arith.maximumf %295, %296 : vector<8x256xf32>
    %298 = vector.extract_strided_slice %297 {offsets = [0, 0], sizes = [4, 256], strides = [1, 1]} : vector<8x256xf32> to vector<4x256xf32>
    %299 = vector.extract_strided_slice %297 {offsets = [4, 0], sizes = [4, 256], strides = [1, 1]} : vector<8x256xf32> to vector<4x256xf32>
    %300 = arith.addf %298, %299 : vector<4x256xf32>
    %c0_197 = arith.constant 0 : index
    %c0_198 = arith.constant 0 : index
    %c0_199 = arith.constant 0 : index
    %c0_200 = arith.constant 0 : index
    %301 = vector.load %arg6[%c0_197, %c0_198, %c0_199, %c0_200] : memref<1x4x4x256xf32, #tpu.memory_space<vmem>>, vector<1x1x4x256xf32>
    %302 = vector.shape_cast %301 : vector<1x1x4x256xf32> to vector<4x256xf32>
    %303 = vector.shape_cast %300 : vector<4x256xf32> to vector<1x1x4x256xf32>
    tpu.vector_store %arg6[%c0_197, %c0_198, %c0_199, %c0_200], %303 {strides = array<i32>} : memref<1x4x4x256xf32, #tpu.memory_space<vmem>>, vector<1x1x4x256xf32>,
    %304 = vector.broadcast %253 : vector<8x1xf32> to vector<8x256xf32>
    %305 = arith.subf %134, %304 : vector<8x256xf32>
    %306 = vector.broadcast %291 : vector<8x1xf32> to vector<8x256xf32>
    %307 = arith.mulf %305, %306 : vector<8x256xf32>
    %cst_201 = arith.constant 0.000000e+00 : f32
    %308 = vector.broadcast %cst_201 : f32 to vector<8x256xf32>
    %309 = arith.maximumf %307, %308 : vector<8x256xf32>
    %310 = vector.extract_strided_slice %309 {offsets = [0, 0], sizes = [4, 256], strides = [1, 1]} : vector<8x256xf32> to vector<4x256xf32>
    %311 = vector.extract_strided_slice %309 {offsets = [4, 0], sizes = [4, 256], strides = [1, 1]} : vector<8x256xf32> to vector<4x256xf32>
    %312 = arith.addf %310, %311 : vector<4x256xf32>
    %c0_202 = arith.constant 0 : index
    %c1_203 = arith.constant 1 : index
    %c0_204 = arith.constant 0 : index
    %c0_205 = arith.constant 0 : index
    %313 = vector.load %arg6[%c0_202, %c1_203, %c0_204, %c0_205] : memref<1x4x4x256xf32, #tpu.memory_space<vmem>>, vector<1x1x4x256xf32>
    %314 = vector.shape_cast %313 : vector<1x1x4x256xf32> to vector<4x256xf32>
    %315 = vector.shape_cast %312 : vector<4x256xf32> to vector<1x1x4x256xf32>
    tpu.vector_store %arg6[%c0_202, %c1_203, %c0_204, %c0_205], %315 {strides = array<i32>} : memref<1x4x4x256xf32, #tpu.memory_space<vmem>>, vector<1x1x4x256xf32>,
    %316 = vector.broadcast %253 : vector<8x1xf32> to vector<8x256xf32>
    %317 = arith.subf %186, %316 : vector<8x256xf32>
    %318 = vector.broadcast %291 : vector<8x1xf32> to vector<8x256xf32>
    %319 = arith.mulf %317, %318 : vector<8x256xf32>
    %cst_206 = arith.constant 0.000000e+00 : f32
    %320 = vector.broadcast %cst_206 : f32 to vector<8x256xf32>
    %321 = arith.maximumf %319, %320 : vector<8x256xf32>
    %322 = vector.extract_strided_slice %321 {offsets = [0, 0], sizes = [4, 256], strides = [1, 1]} : vector<8x256xf32> to vector<4x256xf32>
    %323 = vector.extract_strided_slice %321 {offsets = [4, 0], sizes = [4, 256], strides = [1, 1]} : vector<8x256xf32> to vector<4x256xf32>
    %324 = arith.addf %322, %323 : vector<4x256xf32>
    %c0_207 = arith.constant 0 : index
    %c2_208 = arith.constant 2 : index
    %c0_209 = arith.constant 0 : index
    %c0_210 = arith.constant 0 : index
    %325 = vector.load %arg6[%c0_207, %c2_208, %c0_209, %c0_210] : memref<1x4x4x256xf32, #tpu.memory_space<vmem>>, vector<1x1x4x256xf32>
    %326 = vector.shape_cast %325 : vector<1x1x4x256xf32> to vector<4x256xf32>
    %327 = vector.shape_cast %324 : vector<4x256xf32> to vector<1x1x4x256xf32>
    tpu.vector_store %arg6[%c0_207, %c2_208, %c0_209, %c0_210], %327 {strides = array<i32>} : memref<1x4x4x256xf32, #tpu.memory_space<vmem>>, vector<1x1x4x256xf32>,
    %328 = vector.broadcast %253 : vector<8x1xf32> to vector<8x256xf32>
    %329 = arith.subf %238, %328 : vector<8x256xf32>
    %330 = vector.broadcast %291 : vector<8x1xf32> to vector<8x256xf32>
    %331 = arith.mulf %329, %330 : vector<8x256xf32>
    %cst_211 = arith.constant 0.000000e+00 : f32
    %332 = vector.broadcast %cst_211 : f32 to vector<8x256xf32>
    %333 = arith.maximumf %331, %332 : vector<8x256xf32>
    %334 = vector.extract_strided_slice %333 {offsets = [0, 0], sizes = [4, 256], strides = [1, 1]} : vector<8x256xf32> to vector<4x256xf32>
    %335 = vector.extract_strided_slice %333 {offsets = [4, 0], sizes = [4, 256], strides = [1, 1]} : vector<8x256xf32> to vector<4x256xf32>
    %336 = arith.addf %334, %335 : vector<4x256xf32>
    %c0_212 = arith.constant 0 : index
    %c3_213 = arith.constant 3 : index
    %c0_214 = arith.constant 0 : index
    %c0_215 = arith.constant 0 : index
    %337 = vector.load %arg6[%c0_212, %c3_213, %c0_214, %c0_215] : memref<1x4x4x256xf32, #tpu.memory_space<vmem>>, vector<1x1x4x256xf32>
    %338 = vector.shape_cast %337 : vector<1x1x4x256xf32> to vector<4x256xf32>
    %339 = vector.shape_cast %336 : vector<4x256xf32> to vector<1x1x4x256xf32>
    tpu.vector_store %arg6[%c0_212, %c3_213, %c0_214, %c0_215], %339 {strides = array<i32>} : memref<1x4x4x256xf32, #tpu.memory_space<vmem>>, vector<1x1x4x256xf32>,
    return
  }
  func.func @transform_0(%arg0: i32) -> (i32, i32, i32) {
    %c0_i32 = arith.constant 0 : i32
    %c0_i32_0 = arith.constant 0 : i32
    %c0_i32_1 = arith.constant 0 : i32
    return %arg0, %c0_i32, %c0_i32_0 : i32, i32, i32
  }
  func.func @transform_1(%arg0: i32) -> (i32, i32, i32, i32) {
    %c0_i32 = arith.constant 0 : i32
    %c0_i32_0 = arith.constant 0 : i32
    %c0_i32_1 = arith.constant 0 : i32
    %c0_i32_2 = arith.constant 0 : i32
    return %arg0, %c0_i32, %c0_i32_0, %c0_i32_1 : i32, i32, i32, i32
  }
  func.func @transform_2(%arg0: i32) -> (i32, i32, i32) {
    %c0_i32 = arith.constant 0 : i32
    %c0_i32_0 = arith.constant 0 : i32
    %c0_i32_1 = arith.constant 0 : i32
    %c0_i32_2 = arith.constant 0 : i32
    return %c0_i32, %c0_i32_0, %c0_i32_1 : i32, i32, i32
  }
  func.func @transform_3(%arg0: i32) -> (i32, i32, i32) {
    %c0_i32 = arith.constant 0 : i32
    %c0_i32_0 = arith.constant 0 : i32
    %c0_i32_1 = arith.constant 0 : i32
    %c0_i32_2 = arith.constant 0 : i32
    return %c0_i32, %c0_i32_0, %c0_i32_1 : i32, i32, i32
  }
  func.func @transform_4(%arg0: i32) -> (i32, i32) {
    %c0_i32 = arith.constant 0 : i32
    %c0_i32_0 = arith.constant 0 : i32
    %c0_i32_1 = arith.constant 0 : i32
    return %c0_i32, %c0_i32_0 : i32, i32
  }
  func.func @transform_5(%arg0: i32) -> (i32, i32, i32, i32) {
    %c0_i32 = arith.constant 0 : i32
    %c0_i32_0 = arith.constant 0 : i32
    %c0_i32_1 = arith.constant 0 : i32
    %c0_i32_2 = arith.constant 0 : i32
    return %arg0, %c0_i32, %c0_i32_0, %c0_i32_1 : i32, i32, i32, i32
  }
}

</mosaic_0001>

<bundles_post_ra>
// kernel: tpu_custom_call.1
= control target key start
LH: loop header
LB: loop body
LE: loop exit
PB: predicated region body
PF: predicated region fallthrough
CT: control target
= control target key end

     0   :  { %10 = vsyncpa [#allocation3], 0  ;;  %s4416_s0 = inlined_call_operand.vmem [shape: f32[2,8,256], index: 0, kind: input, shape index: {}]   ;;  %s4417_s1 = inlined_call_operand.vmem [shape: f32[2,4,4,256], index: 1, kind: input, shape index: {}]   ;;  %s4418_s2 = inlined_call_operand.vmem [shape: f32[4,4,8], index: 2, kind: input, shape index: {}]   ;;  %s4419_s3 = inlined_call_operand.vmem [shape: f32[9,8,8], index: 3, kind: input, shape index: {}]   ;;  %s4420_s4 = inlined_call_operand.vmem [shape: f32[4,256], index: 4, kind: input, shape index: {}]   ;;  %s4421_s5 = inlined_call_operand.hbm [shape: f32[2,4,4,256], index: 5, kind: output, shape index: {}]  }
   0x1   :  { %12 = vsyncpa [#allocation3 + $0x1], 0  ;;  %s3867_s18 = smov 0   ;;  %s3869_s19 = smov 0  }
   0x2   :  { %s3871_s20 = smov 0   ;;  %s3873_s21 = smov 0  }
   0x3 LB: > { %s3888_s22 = sadd.s32 4294967295, %s3823_s21   ;;  %s3633_s23 = sadd.s32 4294967294, %s3823_s21   ;;  %s3823_s21 = sphi %s3873_s21, %s4427_s21   ;;  %s3819_s20 = sphi %s3871_s20, %s4426_s20   ;;  %s3815_s19 = sphi %s3869_s19, %s4425_s19   ;;  %s3811_s18 = sphi %s3867_s18, %s4424_s18  }
   0x4   : > { %s3892_s24 = sadd.s32 1, %s3823_s21   ;;  %s140_s25 = sadd.s32 1, %s3819_s20 }
   0x5   : > { %s137_s26 = ssub.s32 %s3823_s21, %s3892_s24  ;;  %p150_p0 = scmp.ne.s32.totalorder %s3819_s20, %s3815_s19 }
   0x6   : > { %p138_p1 = scmp.eq.s32.totalorder %s137_s26, 0  ;;  %p151_p2 = scmp.eq.s32.totalorder %s3888_s22, 1 }
   0x7   : > { %p156_p3 = scmp.ne.s32.totalorder %s3815_s19, %s3811_s18  ;;  %p157_p4 = scmp.eq.s32.totalorder %s3633_s23, 1 }
   0x8   : > { %s3903_s27 = scalar_select %p138_p1, %s3819_s20, %s140_s25  }
   0x9   : > { %p3905_p5 = por %p151_p2, %p150_p0  ;;  %p3909_p6 = por %p157_p4, %p156_p3 }
   0xa   : > { %p3636_p7 = scmp.ge.s32.totalorder %s3823_s21, 1  ;;  %p200_p8 = scmp.lt.s32.totalorder %s3823_s21, 3 }
   0xc   : > { %p201_p9 = pnand %p3636_p7, %p200_p8 }
   0xd   : > { %p233_p10 = scmp.lt.s32.totalorder (!%p201_p9), %s3888_s22, 1  ;;  %s3827_s7 = smov (!%p201_p9), 16  }
   0xe   : > { %204 = sbr.rel (%p201_p9) target bundleno = 957 (0x3bd), region = 40  ;;  %s3828_s8 = smov (!%p201_p9), 1  }
   0xf   : > { %s3830_s10 = smov (!%p201_p9), 127   ;;  %s3831_s11 = smov (!%p201_p9), 113  }
  0x10   : > { %s3832_s12 = smov (!%p201_p9), 112   ;;  %s3833_s13 = smov (!%p201_p9), 111  }
  0x11   : > { %s3706_s26 = sshll.u32 (!%p201_p9), %s3888_s22, 9 }
  0x13   : > { %v3825_v0 = vmov 0.0   ;;  %s234_s30 = scalar_select %p233_p10, %s3888_s22, 1  ;;  %v246_v1 = vld [vmem:[%s4418_s2] sm:$0xf]  ;;  %vm247_vm0 = vcmask 64512   ;;  %vm326_vm1 = vcmask 1043456   ;;  %v582_v31 = vlaneseq }
  0x14   : > { %315 = vmatprep.mubr.f32.mxu0 %v3825_v0  ;;  %398 = vmatprep.mubr.f32.mxu1 %v3825_v0  ;;  %v3643_v4 = vld [vmem:[%s4418_s2 + $0x4] sm:$0xf]  ;;  %v3646_v5 = vld [vmem:[%s4418_s2 + $0x8] sm:$0xf]  ;;  %v3649_v6 = vld [vmem:[%s4418_s2 + $0xc] sm:$0xf] }
  0x15   : > { %s3704_s6 = sshll.u32 %s234_s30, 4  ;;  %s3705_s23 = sshll.u32 %s234_s30, 5  ;;  %v3999_v32 = vshrl.u32 %v582_v31, 7  ;;  %v4006_v35 = vld [vmem:[%s4420_s4] sm:$0xff]  ;;  %v4010_v38 = vand.u32 127, %v582_v31  ;;  %v4041_v59 = vld [vmem:[%s4419_s3 + $0x8] sm:$0xff] }
  0x16   : > { %s237_s9 = scalar_lea.vmem %s4416_s0, %s3704_s6  ;;  %s3945_s6 = scalar_lea.vmem %s4417_s1, %s3705_s23 }
  0x17   : > { %v244_v2 = vld [vmem:[%s237_s9 + $0x8] sm:$0xff]  ;;  %v243_v3 = vld [vmem:[%s237_s9] sm:$0xff]  ;;  %v3648_v7 = vld [vmem:[%s3945_s6 + $0x10] sm:$0xff]  ;;  %s3826_s30 = smov 17   ;;  %s3829_s9 = smov 15   ;;  %v590_v33 = vsub.s32 0, %v3999_v32 }
  0x18   : > { %281 = vmatprep.subr.mxu0 %v244_v2  ;;  %364 = vmatprep.subr.mxu1 %v244_v2  ;;  %v3651_v8 = vld [vmem:[%s3945_s6 + $0x18] sm:$0xff]  ;;  %v491_v11 = vcombine.low %v3648_v7, %v3648_v7  ;;  %v3645_v23 = vld [vmem:[%s3945_s6 + $0x8] sm:$0xff]  ;;  %v322_v27 = vld [vmem:[%s3945_s6] sm:$0xff]  ;;  %v594_v34 = vsub.s32 4, %v3999_v32  ;;  %v610_v36 = vsub.s32 2, %v3999_v32  ;;  %v614_v37 = vsub.s32 6, %v3999_v32 }
  0x19   : > { %282 = vmatpush1.msra.mxu0 %v243_v3  ;;  %365 = vmatpush1.msra.mxu1 %v243_v3  ;;  %v574_v12 = vcombine.low %v3651_v8, %v3651_v8  ;;  %v408_v24 = vcombine.low %v3645_v23, %v3645_v23  ;;  %v324_v28 = vcombine.low %v322_v27, %v322_v27  ;;  %vm584_vm2 = vcmp.lt.s32.totalorder %v4010_v38, 17  ;;  %s230_s23 = sand.u32 1, %s3815_s19  }
  0x1a   : > { %3642 = vmatmul.mubr.msk.f32.vlgmr.msra.gmra.mxu0 %vm247_vm0, %v246_v1  ;;  %3644 = vmatmul.mubr.msk.f32.vlgmr.msra.gmra.mxu1 %vm247_vm0, %v3643_v4  ;;  %v591_v39 = vrot.slane %v4006_v35, %v590_v33  ;;  %v595_v40 = vrot.slane %v4006_v35, %v594_v34  ;;  %v611_v43 = vrot.slane %v4006_v35, %v610_v36  ;;  %vm633_vm3 = vcmp.lt.s32.totalorder %v4010_v38, 16  ;;  %s3637_s25 = sshll.u32 %s230_s23, 5  ;;  %s4376_s22 = scalar_lea.sflag [#allocation3], %s230_s23 }
  0x1b   : > { %447 = vmatprep.subr.mxu0 %v244_v2  ;;  %530 = vmatprep.subr.mxu1 %v244_v2  ;;  %v615_v44 = vrot.slane %v4006_v35, %v614_v37  ;;  %vm878_vm4 = vcmp.lt.s32.totalorder %v4010_v38, 1  ;;  %vm1505_vm5 = vcmp.lt.s32.totalorder %v4010_v38, 15  ;;  %v1512_v31 = vsub.s32 3, %v3999_v32  ;;  %v4130_v37 = vld [vmem:[%s4419_s3 + $0x30] sm:$0xff]  ;;  %s232_s6 = scalar_lea.vmem [#allocation2], %s3637_s25 }
  0x1c   : > { %448 = vmatpush1.msra.mxu0 %v243_v3  ;;  %481 = vmatprep.mubr.f32.mxu0 %v3825_v0  ;;  %v4017_v45 = vrot.slane %v591_v39, %v590_v33  ;;  %v4019_v46 = vrot.slane %v595_v40, %v590_v33  ;;  %v4022_v47 = vrot.slane %v611_v43, %v610_v36  ;;  %v4123_v33 = vld [vmem:[%s4419_s3 + $0x28] sm:$0xff]  ;;  %vm1753_vm6 = vcmp.lt.s32.totalorder %v4010_v38, 127 }
  0x1d   : > { %531 = vmatpush1.msra.mxu1 %v243_v3  ;;  %564 = vmatprep.mubr.f32.mxu1 %v3825_v0  ;;  %v4024_v50 = vrot.slane %v615_v44, %v610_v36  ;;  %v4054_v3 = vld [vmem:[%s4419_s3] sm:$0xff]  ;;  %v4152_v44 = vld [vmem:[%s4419_s3 + $0x38] sm:$0xff]  ;;  %vm2496_vm7 = vcmp.lt.s32.totalorder %v4010_v38, 113  ;;  %vm2598_vm8 = vcmp.lt.s32.totalorder %v4010_v38, 112  ;;  %vm3341_vm9 = vcmp.lt.s32.totalorder %v4010_v38, 111 }
  0x1e   : > { %3647 = vmatmul.mubr.msk.f32.vlgmr.msra.gmra.mxu0 %vm247_vm0, %v3646_v5  ;;  %3650 = vmatmul.mubr.msk.f32.vlgmr.msra.gmra.mxu1 %vm247_vm0, %v3649_v6  ;;  %v4067_v6 = vld [vmem:[%s4419_s3 + $0x10] sm:$0xff] }
  0x1f   : > { %707 = vmatprep.mubr.f32.mxu0 %v3825_v0  ;;  %781 = vmatprep.mubr.f32.mxu1 %v3825_v0 }
  0xda   : > { %v317_v9 = vpop.f32.mrf.mxu0  ;;  %v400_v10 = vpop.f32.mrf.mxu1 }
  0xdb   : > { %v3969_v25 = vsel %vm326_vm1, %v400_v10, %v408_v24  ;;  %v3982_v29 = vsel %vm326_vm1, %v317_v9, %v324_v28 }
  0xdc   : > { %v319_v13 = vpop.f32.mrf.mxu0  ;;  %v402_v14 = vpop.f32.mrf.mxu1 }
  0xdd   : > { %v3972_v26 = vsel %vm326_vm1, %v402_v14, %v3645_v23  ;;  %v3985_v30 = vsel %vm326_vm1, %v319_v13, %v322_v27  ;;  %v4092_v14 = vld [vmem:[%s4419_s3 + $0x18] sm:$0xff] }
  0xde   : > { %v483_v15 = vpop.f32.mrf.mxu0  ;;  %v566_v16 = vpop.f32.mrf.mxu1 }
  0xdf   : > { %v3950_v17 = vsel %vm326_vm1, %v483_v15, %v491_v11  ;;  %v3953_v18 = vsel %vm326_vm1, %v566_v16, %v574_v12  ;;  %v1516_v11 = vsub.s32 7, %v3999_v32  ;;  %v4097_v15 = vld [vmem:[%s4419_s3 + $0x20] sm:$0xff] }
  0xe0   : > { %578 = vrot.lane.b32.xlu0 %v3953_v18, %s3826_s30  ;;  %v568_v19 = vpop.f32.mrf.mxu1  ;;  %629 = vrot.lane.b32.xlu1 %v3950_v17, %s3827_s7  ;;  %v485_v20 = vpop.f32.mrf.mxu0 }
  0xe1   : > { %v3958_v21 = vsel %vm326_vm1, %v568_v19, %v3651_v8  ;;  %v3961_v22 = vsel %vm326_vm1, %v485_v20, %v3648_v7  ;;  %v1517_v24 = vrot.slane %v4006_v35, %v1516_v11 }
  0xe3   : > { %v4136_v40 = vrot.slane %v1517_v24, %v1512_v31 }
  0xe4   : > { %580 = vrot.lane.b32.xlu0 %v3958_v21, %s3826_s30  ;;  %631 = vrot.lane.b32.xlu1 %v3961_v22, %s3827_s7  ;;  %s3559_s30 = sshll.u32 %s232_s6, 4  ;;  %s4372_s30 = int_to_ptr.vmem [resolvable:$true] %s3559_s30 }
  0xe8   : > { %788 = vrot.lane.b32.xlu0 %v3953_v18, %s3827_s7  ;;  %790 = vrot.lane.b32.xlu1 %v3958_v21, %s3827_s7 }
  0xec   : > { %874 = vrot.lane.b32.xlu0 %v3969_v25, %s3828_s8  ;;  %876 = vrot.lane.b32.xlu1 %v3972_v26, %s3828_s8 }
  0xf0   : > { %1117 = vrot.lane.b32.xlu0 %v3953_v18, %s3828_s8  ;;  %1119 = vrot.lane.b32.xlu1 %v3958_v21, %s3828_s8 }
  0xf4   : > { %1501 = vrot.lane.b32.xlu0 %v3950_v17, %s3829_s9  ;;  %1503 = vrot.lane.b32.xlu1 %v3961_v22, %s3829_s9  ;;  %s4370_s9 = scalar_lea.hbm %s4421_s5, %s3706_s26 }
  0xf8   : > { %1749 = vrot.lane.b32.xlu0 %v3982_v29, %s3830_s10  ;;  %1751 = vrot.lane.b32.xlu1 %v3985_v30, %s3830_s10 }
  0xfc   : > { %1977 = vrot.lane.b32.xlu0 %v3950_v17, %s3830_s10  ;;  %1979 = vrot.lane.b32.xlu1 %v3961_v22, %s3830_s10  ;;  %s3763_s10 = scalar_lea.vmem %s4372_s30, 512 }
  0xfd   : > { %p3764_p11 = scmp.ne.s32.totalorder %s4372_s30, %s3763_s10 }
  0xff   : > { %p3765_p12 = pnand %p3764_p11, %p3905_p5 }
 0x100   : > { %2492 = vrot.lane.b32.xlu0 %v3969_v25, %s3831_s11  ;;  %2494 = vrot.lane.b32.xlu1 %v3972_v26, %s3831_s11  ;;  %s3834_s11 = smov [#allocation2]  }
 0x101   : > { %p3766_p13 = pneg %p3765_p12 }
 0x104   : > { %2594 = vrot.lane.b32.xlu0 %v3982_v29, %s3832_s12  ;;  %2596 = vrot.lane.b32.xlu1 %v3985_v30, %s3832_s12 }
 0x108   : > { %2676 = vrot.lane.b32.xlu0 %v3969_v25, %s3832_s12  ;;  %2678 = vrot.lane.b32.xlu1 %v3972_v26, %s3832_s12  ;;  %s3767_s12 = sshll.u32 %s3834_s11, 4  ;;  %s3768_s12 = int_to_ptr.vmem [resolvable:$false] %s3767_s12 }
 0x109   : > { %p3770_p0 = scmp.lt.s32.totalorder %s4372_s30, %s3768_s12 }
 0x10c   : > { %3337 = vrot.lane.b32.xlu0 %v3982_v29, %s3833_s13  ;;  %3339 = vrot.lane.b32.xlu1 %v3985_v30, %s3833_s13  ;;  %s3769_s13 = scalar_lea.vmem %s3768_s12, 1024 }
 0x10d   : > { %p3771_p1 = scmp.lt.s32.totalorder %s3769_s13, %s3763_s10 }
 0x10f   : > { %p3772_p2 = por %p3771_p1, %p3770_p0 }
 0x111   : > { %p3773_p3 = pnand %p3772_p2, %p3766_p13 }
 0x152   : > { %v579_v41 = vpop.permute.xlu0 %578  ;;  %v630_v42 = vpop.permute.xlu1 %629 }
 0x156   : > { %v581_v48 = vpop.permute.xlu0 %580  ;;  %v632_v49 = vpop.permute.xlu1 %631 }
 0x157   : > { %v585_v51 = vsel %vm584_vm2, %v579_v41, %v581_v48  ;;  %v586_v52 = vsel %vm584_vm2, %v581_v48, %v579_v41  ;;  %v634_v53 = vsel %vm633_vm3, %v630_v42, %v632_v49  ;;  %v635_v54 = vsel %vm633_vm3, %v632_v49, %v630_v42 }
 0x158   : > { %v606_v55 = vmul.f32 %v4017_v45, %v586_v52  ;;  %v607_v56 = vmul.f32 %v4019_v46, %v585_v51  ;;  %v4033_v57 = vmul.f32 %v635_v54, %v4017_v45  ;;  %v4036_v58 = vmul.f32 %v634_v53, %v4019_v46 }
 0x159   : > { %v1513_v41 = vrot.slane %v4006_v35, %v1512_v31 }
 0x15a   : > { %v626_v60 = vmul.f32 %v4022_v47, %v606_v55  ;;  %v789_v61 = vpop.permute.xlu0 %788  ;;  %673 = vmatprep.subr.mxu0 %v4036_v58  ;;  %v791_v62 = vpop.permute.xlu1 %790  ;;  %v627_v63 = vmul.f32 %v4024_v50, %v607_v56 }
 0x15b   : > { %v792_v1 = vsel %vm633_vm3, %v789_v61, %v791_v62  ;;  %v793_v2 = vsel %vm633_vm3, %v791_v62, %v789_v61  ;;  %674 = vmatpush1.msra.mxu0 %v4033_v57  ;;  %v4163_v52 = vrot.slane %v1513_v41, %v1512_v31  ;;  %v2505_v61 = vsub.s32 5, %v3999_v32 }
 0x15c   : > { %v4057_v4 = vmul.f32 %v793_v2, %v4017_v45  ;;  %v795_v5 = vmul.f32 %v792_v1, %v4019_v46  ;;  %3653 = vmatmul.mubr.msk.f32.vlgmr.msra.gmra.mxu0 %vm247_vm0, %v4041_v59  ;;  %747 = vmatprep.subr.mxu1 %v627_v63  ;;  %v2501_v2 = vsub.s32 1, %v3999_v32 }
 0x15d   : > { %748 = vmatpush1.msra.mxu1 %v626_v60  ;;  %865 = vmatprep.mubr.f32.mxu0 %v3825_v0 }
 0x15e   : > { %v875_v7 = vpop.permute.xlu0 %874  ;;  %831 = vmatprep.subr.mxu0 %v795_v5  ;;  %v877_v8 = vpop.permute.xlu1 %876  ;;  %3654 = vmatmul.mubr.msk.f32.vlgmr.msra.gmra.mxu1 %vm247_vm0, %v4054_v3 }
 0x15f   : > { %v879_v9 = vsel %vm878_vm4, %v875_v7, %v877_v8  ;;  %v880_v10 = vsel %vm878_vm4, %v877_v8, %v875_v7  ;;  %832 = vmatpush1.msra.mxu0 %v4057_v4  ;;  %952 = vmatprep.mubr.f32.mxu1 %v3825_v0  ;;  %v2506_v7 = vrot.slane %v4006_v35, %v2505_v61 }
 0x160   : > { %v4079_v12 = vmul.f32 %v880_v10, %v4022_v47  ;;  %v4082_v13 = vmul.f32 %v879_v9, %v4024_v50  ;;  %3656 = vmatmul.mubr.msk.f32.vlgmr.msra.gmra.mxu0 %vm247_vm0, %v4067_v6  ;;  %996 = vmatprep.subr.mxu0 %v3985_v30  ;;  %v2502_v8 = vrot.slane %v4006_v35, %v2501_v2 }
 0x161   : > { %997 = vmatpush1.msra.mxu0 %v3982_v29  ;;  %1030 = vmatprep.mubr.f32.mxu0 %v3825_v0  ;;  %v4232_v9 = vrot.slane %v2506_v7, %v2501_v2 }
 0x162   : > { %v1118_v16 = vpop.permute.xlu0 %1117  ;;  %918 = vmatprep.subr.mxu1 %v4082_v13  ;;  %v1120_v19 = vpop.permute.xlu1 %1119  ;;  %v4244_v35 = vrot.slane %v2502_v8, %v2501_v2 }
 0x163   : > { %v1121_v20 = vsel %vm878_vm4, %v1118_v16, %v1120_v19  ;;  %v1122_v23 = vsel %vm878_vm4, %v1120_v19, %v1118_v16  ;;  %919 = vmatpush1.msra.mxu1 %v4079_v12 }
 0x164   : > { %v4107_v27 = vmul.f32 %v1122_v23, %v4022_v47  ;;  %v4110_v28 = vmul.f32 %v1121_v20, %v4024_v50  ;;  %3658 = vmatmul.mubr.msk.f32.vlgmr.msra.gmra.mxu1 %vm247_vm0, %v4092_v14  ;;  %3660 = vmatmul.mubr.msk.f32.vlgmr.msra.gmra.mxu0 %vm247_vm0, %v4097_v15 }
 0x165   : > { %1074 = vmatprep.subr.mxu1 %v3972_v26  ;;  %1108 = vmatprep.mubr.f32.mxu1 %v3825_v0 }
 0x166   : > { %1075 = vmatpush1.msra.mxu1 %v3969_v25  ;;  %v1502_v34 = vpop.permute.xlu0 %1501  ;;  %v1504_v36 = vpop.permute.xlu1 %1503  ;;  %1160 = vmatprep.subr.mxu0 %v4110_v28 }
 0x167   : > { %1238 = vmatprep.subr.mxu1 %v3961_v22  ;;  %v1506_v39 = vsel %vm1505_vm5, %v1502_v34, %v1504_v36  ;;  %1161 = vmatpush1.msra.mxu0 %v4107_v27  ;;  %v1507_v43 = vsel %vm1505_vm5, %v1504_v36, %v1502_v34 }
 0x168   : > { %v1509_v42 = vmul.f32 %v1506_v39, %v4019_v46  ;;  %1194 = vmatprep.mubr.f32.mxu0 %v3825_v0  ;;  %3662 = vmatmul.mubr.msk.f32.vlgmr.msra.gmra.mxu1 %vm247_vm0, %v4123_v33  ;;  %v4157_v46 = vld [vmem:[%s4419_s3 + $0x40] sm:$0xff]  ;;  %v1508_v53 = vmul.f32 %v1507_v43, %v4017_v45 }
 0x169   : > { %3664 = vmatmul.mubr.msk.f32.vlgmr.msra.gmra.mxu0 %vm247_vm0, %v4130_v37  ;;  %1239 = vmatpush1.msra.mxu1 %v3950_v17 }
 0x16a   : > { %1316 = vmatprep.subr.mxu0 %v3958_v21  ;;  %1389 = vmatprep.subr.mxu1 %v795_v5  ;;  %v1750_v48 = vpop.permute.xlu0 %1749  ;;  %v1752_v49 = vpop.permute.xlu1 %1751  ;;  %v1529_v51 = vmul.f32 %v4136_v40, %v1509_v42  ;;  %v1528_v45 = vmul.f32 %v4163_v52, %v1508_v53 }
 0x16b   : > { %1317 = vmatpush1.msra.mxu0 %v3953_v18  ;;  %1272 = vmatprep.mubr.f32.mxu1 %v3825_v0  ;;  %v1755_v54 = vsel %vm1753_vm6, %v1752_v49, %v1750_v48  ;;  %v1754_v55 = vsel %vm1753_vm6, %v1750_v48, %v1752_v49 }
 0x16c   : > { %1460 = vmatprep.subr.mxu0 %v4036_v58  ;;  %1350 = vmatprep.mubr.f32.mxu0 %v3825_v0  ;;  %v4183_v56 = vmul.f32 %v1755_v54, %v4136_v40 }
 0x16d   : > { %3666 = vmatmul.mubr.msk.f32.vlgmr.msra.gmra.mxu1 %vm247_vm0, %v4152_v44  ;;  %3668 = vmatmul.mubr.msk.f32.vlgmr.msra.gmra.mxu0 %vm247_vm0, %v4157_v46 }
 0x16e   : > { %1390 = vmatpush1.msra.mxu1 %v4057_v4  ;;  %1461 = vmatpush1.msra.mxu0 %v4033_v57  ;;  %v1978_v58 = vpop.permute.xlu0 %1977  ;;  %v1980_v60 = vpop.permute.xlu1 %1979  ;;  %v4193_v57 = vmul.f32 %v1754_v55, %v4163_v52 }
 0x16f   : > { %1560 = vmatprep.subr.mxu1 %v1529_v51  ;;  %1633 = vmatprep.subr.mxu0 %v3985_v30  ;;  %v1982_v62 = vsel %vm1753_vm6, %v1980_v60, %v1978_v58  ;;  %v1981_v4 = vsel %vm1753_vm6, %v1978_v58, %v1980_v60 }
 0x170   : > { %1423 = vmatprep.mubr.f32.mxu1 %v3825_v0  ;;  %1494 = vmatprep.mubr.f32.mxu0 %v3825_v0  ;;  %v4214_v5 = vmul.f32 %v1982_v62, %v4136_v40  ;;  %v4227_v32 = vmul.f32 %v1981_v4, %v4163_v52 }
 0x171   : > { %3669 = vmatmul.mubr.msk.f32.vlgmr.msra.gmra.mxu1 %vm247_vm0, %v4041_v59  ;;  %3670 = vmatmul.mubr.msk.f32.vlgmr.msra.gmra.mxu0 %vm247_vm0, %v4054_v3 }
 0x172   : > { %1561 = vmatpush1.msra.mxu1 %v1528_v45  ;;  %1634 = vmatpush1.msra.mxu0 %v3982_v29  ;;  %v2493_v63 = vpop.permute.xlu0 %2492  ;;  %v2495_v1 = vpop.permute.xlu1 %2494 }
 0x173   : > { %1706 = vmatprep.subr.mxu1 %v3972_v26  ;;  %1788 = vmatprep.subr.mxu0 %v4183_v56  ;;  %v2498_v16 = vsel %vm2496_vm7, %v2495_v1, %v2493_v63  ;;  %v2497_v19 = vsel %vm2496_vm7, %v2493_v63, %v2495_v1 }
 0x174   : > { %1594 = vmatprep.mubr.f32.mxu1 %v3825_v0  ;;  %1667 = vmatprep.mubr.f32.mxu0 %v3825_v0  ;;  %v2518_v20 = vmul.f32 %v4232_v9, %v2498_v16  ;;  %v2517_v24 = vmul.f32 %v4244_v35, %v2497_v19 }
 0x175   : > { %3671 = vmatmul.mubr.msk.f32.vlgmr.msra.gmra.mxu1 %vm247_vm0, %v4067_v6  ;;  %3672 = vmatmul.mubr.msk.f32.vlgmr.msra.gmra.mxu0 %vm247_vm0, %v4092_v14 }
 0x176   : > { %1707 = vmatpush1.msra.mxu1 %v3969_v25  ;;  %1789 = vmatpush1.msra.mxu0 %v4193_v57  ;;  %v2595_v10 = vpop.permute.xlu0 %2594  ;;  %v2597_v11 = vpop.permute.xlu1 %2596  ;;  %v2519_v34 = vmul.f32 %v2517_v24, %v4022_v47 }
 0x177   : > { %1861 = vmatprep.subr.mxu1 %v3961_v22  ;;  %1934 = vmatprep.subr.mxu0 %v3958_v21  ;;  %v2600_v31 = vsel %vm2598_vm8, %v2597_v11, %v2595_v10  ;;  %v2599_v36 = vsel %vm2598_vm8, %v2595_v10, %v2597_v11 }
 0x178   : > { %1740 = vmatprep.mubr.f32.mxu1 %v3825_v0  ;;  %1822 = vmatprep.mubr.f32.mxu0 %v3825_v0  ;;  %v2601_v47 = vmul.f32 %v2599_v36, %v4244_v35 }
 0x179   : > { %3673 = vmatmul.mubr.msk.f32.vlgmr.msra.gmra.mxu1 %vm247_vm0, %v4097_v15  ;;  %3674 = vmatmul.mubr.msk.f32.vlgmr.msra.gmra.mxu0 %vm247_vm0, %v4123_v33 }
 0x17a   : > { %1862 = vmatpush1.msra.mxu1 %v3950_v17  ;;  %1935 = vmatpush1.msra.mxu0 %v3953_v18  ;;  %v2679_v23 = vpop.permute.xlu1 %2678 }
 0x17b   : > { %2015 = vmatprep.subr.mxu1 %v4214_v5  ;;  %2088 = vmatprep.subr.mxu0 %v3985_v30 }
 0x17c   : > { %1895 = vmatprep.mubr.f32.mxu1 %v3825_v0  ;;  %1968 = vmatprep.mubr.f32.mxu0 %v3825_v0 }
 0x17d   : > { %3675 = vmatmul.mubr.msk.f32.vlgmr.msra.gmra.mxu1 %vm247_vm0, %v4130_v37  ;;  %3676 = vmatmul.mubr.msk.f32.vlgmr.msra.gmra.mxu0 %vm247_vm0, %v4152_v44 }
 0x17e   : > { %2016 = vmatpush1.msra.mxu1 %v4227_v32  ;;  %2089 = vmatpush1.msra.mxu0 %v3982_v29 }
 0x17f   : > { %2159 = vmatprep.subr.mxu1 %v4082_v13  ;;  %2230 = vmatprep.subr.mxu0 %v3972_v26  ;;  %v2677_v13 = vpop.permute.xlu0 %2676 }
 0x180   : > { %2049 = vmatprep.mubr.f32.mxu1 %v3825_v0  ;;  %2122 = vmatprep.mubr.f32.mxu0 %v3825_v0  ;;  %v2680_v39 = vsel %vm2598_vm8, %v2677_v13, %v2679_v23 }
 0x181   : > { %3677 = vmatmul.mubr.msk.f32.vlgmr.msra.gmra.mxu1 %vm247_vm0, %v4157_v46  ;;  %3678 = vmatmul.mubr.msk.f32.vlgmr.msra.gmra.mxu0 %vm247_vm0, %v4041_v59  ;;  %v2682_v41 = vmul.f32 %v2680_v39, %v4244_v35 }
 0x182   : > { %2160 = vmatpush1.msra.mxu1 %v4079_v12  ;;  %2231 = vmatpush1.msra.mxu0 %v3969_v25  ;;  %v2520_v12 = vmul.f32 %v2518_v20, %v4024_v50  ;;  %v2602_v50 = vmul.f32 %v2600_v31, %v4232_v9 }
 0x183   : > { %2303 = vmatprep.subr.mxu1 %v4110_v28  ;;  %2376 = vmatprep.subr.mxu0 %v3961_v22  ;;  %v2681_v28 = vsel %vm2598_vm8, %v2679_v23, %v2677_v13  ;;  %v3338_v42 = vpop.permute.xlu0 %3337 }
 0x184   : > { %2193 = vmatprep.mubr.f32.mxu1 %v3825_v0  ;;  %2264 = vmatprep.mubr.f32.mxu0 %v3825_v0 }
 0x185   : > { %3679 = vmatmul.mubr.msk.f32.vlgmr.msra.gmra.mxu1 %vm247_vm0, %v4054_v3  ;;  %3680 = vmatmul.mubr.msk.f32.vlgmr.msra.gmra.mxu0 %vm247_vm0, %v4067_v6 }
 0x186   : > { %2304 = vmatpush1.msra.mxu1 %v4107_v27  ;;  %2377 = vmatpush1.msra.mxu0 %v3950_v17  ;;  %v2683_v27 = vmul.f32 %v2681_v28, %v4232_v9 }
 0x187   : > { %2449 = vmatprep.subr.mxu1 %v3958_v21  ;;  %2551 = vmatprep.subr.mxu0 %v2520_v12 }
 0x188   : > { %2337 = vmatprep.mubr.f32.mxu1 %v3825_v0  ;;  %2410 = vmatprep.mubr.f32.mxu0 %v3825_v0 }
 0x189   : > { %3681 = vmatmul.mubr.msk.f32.vlgmr.msra.gmra.mxu1 %vm247_vm0, %v4092_v14  ;;  %3682 = vmatmul.mubr.msk.f32.vlgmr.msra.gmra.mxu0 %vm247_vm0, %v4097_v15 }
 0x18a   : > { %2450 = vmatpush1.msra.mxu1 %v3953_v18  ;;  %2552 = vmatpush1.msra.mxu0 %v2519_v34 }
 0x18b   : > { %2633 = vmatprep.subr.mxu1 %v2602_v50  ;;  %2714 = vmatprep.subr.mxu0 %v2683_v27 }
 0x18c   : > { %2483 = vmatprep.mubr.f32.mxu1 %v3825_v0  ;;  %2585 = vmatprep.mubr.f32.mxu0 %v3825_v0 }
 0x18d   : > { %3683 = vmatmul.mubr.msk.f32.vlgmr.msra.gmra.mxu1 %vm247_vm0, %v4123_v33  ;;  %3684 = vmatmul.mubr.msk.f32.vlgmr.msra.gmra.mxu0 %vm247_vm0, %v4130_v37 }
 0x18e   : > { %2634 = vmatpush1.msra.mxu1 %v2601_v47  ;;  %2715 = vmatpush1.msra.mxu0 %v2682_v41 }
 0x18f   : > { %2787 = vmatprep.subr.mxu1 %v3972_v26  ;;  %2858 = vmatprep.subr.mxu0 %v3985_v30  ;;  %v3340_v26 = vpop.permute.xlu1 %3339 }
 0x190   : > { %2667 = vmatprep.mubr.f32.mxu1 %v3825_v0  ;;  %2748 = vmatprep.mubr.f32.mxu0 %v3825_v0 }
 0x191   : > { %3685 = vmatmul.mubr.msk.f32.vlgmr.msra.gmra.mxu1 %vm247_vm0, %v4152_v44  ;;  %3686 = vmatmul.mubr.msk.f32.vlgmr.msra.gmra.mxu0 %vm247_vm0, %v4157_v46 }
 0x192   : > { %2788 = vmatpush1.msra.mxu1 %v3969_v25  ;;  %2859 = vmatpush1.msra.mxu0 %v3982_v29  ;;  %v3343_v25 = vsel %vm3341_vm9, %v3340_v26, %v3338_v42 }
 0x193   : > { %2929 = vmatprep.subr.mxu1 %v4183_v56  ;;  %3002 = vmatprep.subr.mxu0 %v3961_v22  ;;  %v3342_v22 = vsel %vm3341_vm9, %v3338_v42, %v3340_v26  ;;  %v3345_v29 = vmul.f32 %v3343_v25, %v4232_v9 }
 0x194   : > { %2821 = vmatprep.mubr.f32.mxu1 %v3825_v0  ;;  %2892 = vmatprep.mubr.f32.mxu0 %v3825_v0 }
 0x195   : > { %3687 = vmatmul.mubr.msk.f32.vlgmr.msra.gmra.mxu1 %vm247_vm0, %v4041_v59  ;;  %3688 = vmatmul.mubr.msk.f32.vlgmr.msra.gmra.mxu0 %vm247_vm0, %v4054_v3 }
 0x196   : > { %2930 = vmatpush1.msra.mxu1 %v4193_v57  ;;  %3003 = vmatpush1.msra.mxu0 %v3950_v17  ;;  %v3344_v17 = vmul.f32 %v3342_v22, %v4244_v35 }
 0x197   : > { %3075 = vmatprep.subr.mxu1 %v3958_v21  ;;  %3148 = vmatprep.subr.mxu0 %v4214_v5  ;;  %v3347_v21 = vmul.f32 %v3345_v29, %v4136_v40 }
 0x198   : > { %2963 = vmatprep.mubr.f32.mxu1 %v3825_v0  ;;  %3036 = vmatprep.mubr.f32.mxu0 %v3825_v0 }
 0x199   : > { %3689 = vmatmul.mubr.msk.f32.vlgmr.msra.gmra.mxu1 %vm247_vm0, %v4067_v6  ;;  %3690 = vmatmul.mubr.msk.f32.vlgmr.msra.gmra.mxu0 %vm247_vm0, %v4092_v14 }
 0x19a   : > { %3076 = vmatpush1.msra.mxu1 %v3953_v18  ;;  %3149 = vmatpush1.msra.mxu0 %v4227_v32  ;;  %v3346_v18 = vmul.f32 %v3344_v17, %v4163_v52 }
 0x19b   : > { %3221 = vmatprep.subr.mxu1 %v2602_v50  ;;  %3294 = vmatprep.subr.mxu0 %v2683_v27 }
 0x19c   : > { %3109 = vmatprep.mubr.f32.mxu1 %v3825_v0  ;;  %3182 = vmatprep.mubr.f32.mxu0 %v3825_v0 }
 0x19d   : > { %3691 = vmatmul.mubr.msk.f32.vlgmr.msra.gmra.mxu1 %vm247_vm0, %v4097_v15  ;;  %3692 = vmatmul.mubr.msk.f32.vlgmr.msra.gmra.mxu0 %vm247_vm0, %v4123_v33 }
 0x19e   : > { %3222 = vmatpush1.msra.mxu1 %v2601_v47  ;;  %3295 = vmatpush1.msra.mxu0 %v2682_v41 }
 0x19f   : > { %3378 = vmatprep.subr.mxu1 %v3347_v21  ;;  %3255 = vmatprep.mubr.f32.mxu1 %v3825_v0 }
 0x1a0   : > { %3328 = vmatprep.mubr.f32.mxu0 %v3825_v0 }
 0x1a1   : > { %3693 = vmatmul.mubr.msk.f32.vlgmr.msra.gmra.mxu1 %vm247_vm0, %v4130_v37  ;;  %3694 = vmatmul.mubr.msk.f32.vlgmr.msra.gmra.mxu0 %vm247_vm0, %v4152_v44 }
 0x1a2   : > { %3379 = vmatpush1.msra.mxu1 %v3346_v18  ;;  %3412 = vmatprep.mubr.f32.mxu1 %v3825_v0 }
 0x1a5   : > { %3695 = vmatmul.mubr.msk.f32.vlgmr.msra.gmra.mxu1 %vm247_vm0, %v4157_v46 }
 0x21c   : > { %v709_v30 = vpop.f32.mrf.mxu0 }
 0x21e   : > { %v711_v38 = vpop.f32.mrf.mxu0  ;;  %v783_v59 = vpop.f32.mrf.mxu1 }
 0x21f   : > { %v784_v3 = vadd.f32 %v783_v59, %v709_v30 }
 0x220   : > { %v785_v6 = vpop.f32.mrf.mxu1  ;;  %v867_v14 = vpop.f32.mrf.mxu0 }
 0x221   : > { %v786_v15 = vadd.f32 %v785_v6, %v711_v38  ;;  %v872_v40 = vadd.f32 %v867_v14, %v784_v3 }
 0x222   : > { %v869_v33 = vpop.f32.mrf.mxu0 }
 0x223   : > { %v873_v48 = vadd.f32 %v869_v33, %v786_v15 }
 0x224   : > { %v954_v43 = vpop.f32.mrf.mxu1  ;;  %v1032_v37 = vpop.f32.mrf.mxu0 }
 0x225   : > { %v959_v49 = vadd.f32 %v954_v43, %v872_v40 }
 0x226   : > { %v956_v44 = vpop.f32.mrf.mxu1  ;;  %v1034_v51 = vpop.f32.mrf.mxu0 }
 0x227   : > { %v1037_v52 = vadd.f32 %v1032_v37, %v959_v49  ;;  %v960_v0 = vadd.f32 %v956_v44, %v873_v48 }
 0x228   : > { %v1110_v53 = vpop.f32.mrf.mxu1 }
 0x229   : > { %v1038_v54 = vadd.f32 %v1034_v51, %v960_v0  ;;  %v1115_v46 = vadd.f32 %v1110_v53, %v1037_v52  ;;  %v1196_v45 = vpop.f32.mrf.mxu0 }
 0x22a   : > { %v1112_v55 = vpop.f32.mrf.mxu1 }
 0x22b   : > { %v1201_v56 = vadd.f32 %v1196_v45, %v1115_v46  ;;  %v1116_v58 = vadd.f32 %v1112_v55, %v1038_v54  ;;  %v1198_v60 = vpop.f32.mrf.mxu0 }
 0x22d   : > { %v1202_v57 = vadd.f32 %v1198_v60, %v1116_v58  ;;  %v1274_v61 = vpop.f32.mrf.mxu1  ;;  %v1352_v62 = vpop.f32.mrf.mxu0 }
 0x22e   : > { %v1279_v63 = vadd.f32 %v1274_v61, %v1201_v56 }
 0x22f   : > { %v1276_v1 = vpop.f32.mrf.mxu1  ;;  %v1354_v2 = vpop.f32.mrf.mxu0 }
 0x230   : > { %v1280_v4 = vadd.f32 %v1276_v1, %v1202_v57  ;;  %v4347_v32 = vadd.f32 %v1352_v62, %v1279_v63 }
 0x231   : > { %v1425_v5 = vpop.f32.mrf.mxu1  ;;  %v1496_v7 = vpop.f32.mrf.mxu0 }
 0x232   : > { %v4349_v8 = vadd.f32 %v1354_v2, %v1280_v4  ;;  %v1497_v11 = vadd.f32 %v1496_v7, %v1425_v5 }
 0x233   : > { %v1427_v9 = vpop.f32.mrf.mxu1  ;;  %v1498_v10 = vpop.f32.mrf.mxu0 }
 0x234   : > { %v3421_v16 = vadd.f32 %v4349_v8, %v4347_v32  ;;  %v1499_v20 = vadd.f32 %v1498_v10, %v1427_v9 }
 0x235   : > { %v1596_v35 = vpop.f32.mrf.mxu1  ;;  %v1669_v19 = vpop.f32.mrf.mxu0 }
 0x236   : > { %v1601_v13 = vadd.f32 %v1596_v35, %v1497_v11  ;;  %3422 = vadd.xlane.f32.xlu0 %v3421_v16 }
 0x237   : > { %v1598_v23 = vpop.f32.mrf.mxu1  ;;  %v1671_v24 = vpop.f32.mrf.mxu0 }
 0x238   : > { %v1674_v12 = vadd.f32 %v1669_v19, %v1601_v13  ;;  %v1602_v31 = vadd.f32 %v1598_v23, %v1499_v20 }
 0x239   : > { %v1742_v28 = vpop.f32.mrf.mxu1  ;;  %v1824_v34 = vpop.f32.mrf.mxu0 }
 0x23a   : > { %v1675_v36 = vadd.f32 %v1671_v24, %v1602_v31  ;;  %v1747_v50 = vadd.f32 %v1742_v28, %v1674_v12 }
 0x23b   : > { %v1744_v39 = vpop.f32.mrf.mxu1  ;;  %v1826_v27 = vpop.f32.mrf.mxu0 }
 0x23c   : > { %v1829_v47 = vadd.f32 %v1824_v34, %v1747_v50  ;;  %v1748_v41 = vadd.f32 %v1744_v39, %v1675_v36 }
 0x23d   : > { %v1897_v42 = vpop.f32.mrf.mxu1  ;;  %v1970_v26 = vpop.f32.mrf.mxu0 }
 0x23e   : > { %v1830_v25 = vadd.f32 %v1826_v27, %v1748_v41  ;;  %v1902_v22 = vadd.f32 %v1897_v42, %v1829_v47 }
 0x23f   : > { %v1899_v29 = vpop.f32.mrf.mxu1  ;;  %v1972_v17 = vpop.f32.mrf.mxu0 }
 0x240   : > { %v1975_v21 = vadd.f32 %v1970_v26, %v1902_v22  ;;  %v1903_v18 = vadd.f32 %v1899_v29, %v1830_v25 }
 0x241   : > { %v2051_v30 = vpop.f32.mrf.mxu1  ;;  %v2124_v38 = vpop.f32.mrf.mxu0 }
 0x242   : > { %v1976_v59 = vadd.f32 %v1972_v17, %v1903_v18  ;;  %v4353_v14 = vadd.f32 %v2051_v30, %v1975_v21 }
 0x243   : > { %v2053_v3 = vpop.f32.mrf.mxu1  ;;  %v2126_v6 = vpop.f32.mrf.mxu0 }
 0x244   : > { %v4355_v15 = vadd.f32 %v2053_v3, %v1976_v59 }
 0x245   : > { %v2195_v33 = vpop.f32.mrf.mxu1  ;;  %v2266_v40 = vpop.f32.mrf.mxu0 }
 0x246   : > { %v2196_v43 = vadd.f32 %v2195_v33, %v2124_v38  ;;  %v3425_v37 = vadd.f32 %v4355_v15, %v4353_v14 }
 0x247   : > { %v2197_v48 = vpop.f32.mrf.mxu1  ;;  %v2268_v49 = vpop.f32.mrf.mxu0 }
 0x248   : > { %v2271_v44 = vadd.f32 %v2266_v40, %v2196_v43  ;;  %v2198_v51 = vadd.f32 %v2197_v48, %v2126_v6  ;;  %3426 = vadd.xlane.f32.xlu1 %v3425_v37 }
 0x249   : > { %v2339_v52 = vpop.f32.mrf.mxu1  ;;  %v2412_v0 = vpop.f32.mrf.mxu0 }
 0x24a   : > { %v2272_v53 = vadd.f32 %v2268_v49, %v2198_v51  ;;  %v2344_v54 = vadd.f32 %v2339_v52, %v2271_v44 }
 0x24b   : > { %v2341_v46 = vpop.f32.mrf.mxu1  ;;  %v2414_v45 = vpop.f32.mrf.mxu0 }
 0x24c   : > { %v2417_v55 = vadd.f32 %v2412_v0, %v2344_v54  ;;  %v2345_v56 = vadd.f32 %v2341_v46, %v2272_v53 }
 0x24d   : > { %v2485_v58 = vpop.f32.mrf.mxu1  ;;  %v2587_v60 = vpop.f32.mrf.mxu0 }
 0x24e   : > { %v2418_v57 = vadd.f32 %v2414_v45, %v2345_v56  ;;  %v2490_v61 = vadd.f32 %v2485_v58, %v2417_v55 }
 0x24f   : > { %v2487_v62 = vpop.f32.mrf.mxu1  ;;  %v2589_v63 = vpop.f32.mrf.mxu0 }
 0x250   : > { %v2592_v1 = vadd.f32 %v2587_v60, %v2490_v61  ;;  %v2491_v2 = vadd.f32 %v2487_v62, %v2418_v57 }
 0x251   : > { %v2669_v4 = vpop.f32.mrf.mxu1  ;;  %v2750_v5 = vpop.f32.mrf.mxu0 }
 0x252   : > { %v2593_v7 = vadd.f32 %v2589_v63, %v2491_v2  ;;  %v2674_v9 = vadd.f32 %v2669_v4, %v2592_v1 }
 0x253   : > { %v2671_v10 = vpop.f32.mrf.mxu1  ;;  %v2752_v11 = vpop.f32.mrf.mxu0 }
 0x254   : > { %v2675_v16 = vadd.f32 %v2671_v10, %v2593_v7  ;;  %v2755_v20 = vadd.f32 %v2750_v5, %v2674_v9 }
 0x255   : > { %v2823_v35 = vpop.f32.mrf.mxu1  ;;  %v2894_v19 = vpop.f32.mrf.mxu0 }
 0x256   : > { %v2756_v13 = vadd.f32 %v2752_v11, %v2675_v16  ;;  %v2895_v12 = vadd.f32 %v2894_v19, %v2823_v35 }
 0x257   : > { %v2825_v23 = vpop.f32.mrf.mxu1  ;;  %v2896_v24 = vpop.f32.mrf.mxu0 }
 0x258   : > { %v3429_v31 = vadd.f32 %v2756_v13, %v2755_v20  ;;  %v2897_v36 = vadd.f32 %v2896_v24, %v2825_v23 }
 0x259   : > { %v2965_v28 = vpop.f32.mrf.mxu1  ;;  %v3038_v34 = vpop.f32.mrf.mxu0 }
 0x25a   : > { %v2970_v50 = vadd.f32 %v2965_v28, %v2895_v12  ;;  %3430 = vadd.xlane.f32.xlu0 %v3429_v31 }
 0x25b   : > { %v2967_v39 = vpop.f32.mrf.mxu1  ;;  %v3040_v27 = vpop.f32.mrf.mxu0 }
 0x25c   : > { %v2971_v47 = vadd.f32 %v2967_v39, %v2897_v36  ;;  %v3043_v41 = vadd.f32 %v3038_v34, %v2970_v50 }
 0x25d   : > { %v3111_v42 = vpop.f32.mrf.mxu1  ;;  %v3184_v26 = vpop.f32.mrf.mxu0 }
 0x25e   : > { %v3044_v25 = vadd.f32 %v3040_v27, %v2971_v47  ;;  %v3116_v22 = vadd.f32 %v3111_v42, %v3043_v41 }
 0x25f   : > { %v3113_v29 = vpop.f32.mrf.mxu1  ;;  %v3186_v17 = vpop.f32.mrf.mxu0 }
 0x260   : > { %v3117_v21 = vadd.f32 %v3113_v29, %v3044_v25  ;;  %v3189_v18 = vadd.f32 %v3184_v26, %v3116_v22 }
 0x261   : > { %v3257_v30 = vpop.f32.mrf.mxu1  ;;  %v3330_v38 = vpop.f32.mrf.mxu0 }
 0x262   : > { %v3190_v59 = vadd.f32 %v3186_v17, %v3117_v21  ;;  %v3262_v3 = vadd.f32 %v3257_v30, %v3189_v18 }
 0x263   : > { %v3259_v6 = vpop.f32.mrf.mxu1  ;;  %v3332_v43 = vpop.f32.mrf.mxu0 }
 0x264   : > { %v3263_v33 = vadd.f32 %v3259_v6, %v3190_v59  ;;  %v3335_v40 = vadd.f32 %v3330_v38, %v3262_v3 }
 0x265   : > { %v3414_v37 = vpop.f32.mrf.mxu1 }
 0x266   : > { %v3336_v48 = vadd.f32 %v3332_v43, %v3263_v33  ;;  %v3419_v44 = vadd.f32 %v3414_v37, %v3335_v40 }
 0x267   : > { %v3416_v49 = vpop.f32.mrf.mxu1 }
 0x268   : > { %v3420_v51 = vadd.f32 %v3416_v49, %v3336_v48 }
 0x26a   : > { %v3433_v52 = vadd.f32 %v3420_v51, %v3419_v44 }
 0x26c   : > { %3434 = vadd.xlane.f32.xlu0 %v3433_v52 }
 0x2bf   : > { %v3423_v0 = vpop.xlane.xlu0 %3422 }
 0x2d1   : > { %v3427_v53 = vpop.xlane.xlu1 %3426 }
 0x2d2   : > { %v3428_v46 = vadd.f32 %v3427_v53, %v3423_v0 }
 0x2e3   : > { %v3431_v54 = vpop.xlane.xlu0 %3430 }
 0x2e4   : > { %v3432_v45 = vadd.f32 %v3431_v54, %v3428_v46 }
 0x2f5   : > { %v3435_v55 = vpop.xlane.xlu0 %3434 }
 0x2f6   : > { %v3436_v56 = vadd.f32 %v3435_v55, %v3432_v45 }
 0x2f8   : > { %v3438_v58 = vmul.f32 0.0009765625, %v3436_v56 }
 0x2fa   : > { %v3447_v60 = vsub.f32 %v4353_v14, %v3438_v58  ;;  %v3448_v57 = vsub.f32 %v4355_v15, %v3438_v58  ;;  %v3439_v61 = vsub.f32 %v4347_v32, %v3438_v58  ;;  %v3440_v62 = vsub.f32 %v4349_v8, %v3438_v58 }
 0x2fb   : > { %v3463_v63 = vsub.f32 %v3419_v44, %v3438_v58  ;;  %v3464_v1 = vsub.f32 %v3420_v51, %v3438_v58  ;;  %v3455_v2 = vsub.f32 %v2755_v20, %v3438_v58  ;;  %v3456_v4 = vsub.f32 %v2756_v13, %v3438_v58 }
 0x2fc   : > { %v3449_v5 = vmul.f32 %v3447_v60, %v3447_v60  ;;  %v3450_v7 = vmul.f32 %v3448_v57, %v3448_v57  ;;  %v3441_v9 = vmul.f32 %v3439_v61, %v3439_v61  ;;  %v3442_v10 = vmul.f32 %v3440_v62, %v3440_v62 }
 0x2fd   : > { %v3465_v11 = vmul.f32 %v3463_v63, %v3463_v63  ;;  %v3466_v16 = vmul.f32 %v3464_v1, %v3464_v1  ;;  %v3457_v23 = vmul.f32 %v3455_v2, %v3455_v2  ;;  %v3458_v14 = vmul.f32 %v3456_v4, %v3456_v4 }
 0x2fe   : > { %v3451_v35 = vadd.f32 %v3450_v7, %v3449_v5  ;;  %v3443_v19 = vadd.f32 %v3442_v10, %v3441_v9 }
 0x2ff   : > { %v3467_v32 = vadd.f32 %v3466_v16, %v3465_v11  ;;  %v3459_v8 = vadd.f32 %v3458_v14, %v3457_v23 }
 0x300   : > { %3452 = vadd.xlane.f32.xlu0 %v3451_v35  ;;  %3444 = vadd.xlane.f32.xlu1 %v3443_v19 }
 0x304   : > { %3468 = vadd.xlane.f32.xlu0 %v3467_v32  ;;  %3460 = vadd.xlane.f32.xlu1 %v3459_v8 }
 0x389   : > { %v3453_v15 = vpop.xlane.xlu0 %3452  ;;  %v3445_v20 = vpop.xlane.xlu1 %3444 }
 0x38a   : > { %v3454_v13 = vadd.f32 %v3453_v15, %v3445_v20 }
 0x38d   : > { %v3461_v24 = vpop.xlane.xlu1 %3460  ;;  %v3469_v31 = vpop.xlane.xlu0 %3468 }
 0x38e   : > { %v3462_v12 = vadd.f32 %v3461_v24, %v3454_v13 }
 0x390   : > { %v3470_v28 = vadd.f32 %v3469_v31, %v3462_v12 }
 0x392   : > { %v3471_v34 = vmul.f32 0.0009765625, %v3470_v28 }
 0x394   : > { %v3472_v36 = vadd.f32 1e-05, %v3471_v34 }
 0x396   : > { %3761 = vrsqrt.f32 %v3472_v36 }
 0x3a3   : > { %v3762_v50 = vpop.eup %3761 }
 0x3a4   : > { %v3474_v39 = vmul.f32 %v3762_v50, %v3439_v61  ;;  %v3475_v27 = vmul.f32 %v3762_v50, %v3440_v62  ;;  %v3491_v47 = vmul.f32 %v3762_v50, %v3447_v60  ;;  %v3492_v41 = vmul.f32 %v3762_v50, %v3448_v57 }
 0x3a5   : > { %v3509_v42 = vmul.f32 %v3762_v50, %v3455_v2  ;;  %v3510_v26 = vmul.f32 %v3762_v50, %v3456_v4  ;;  %v3527_v25 = vmul.f32 %v3762_v50, %v3463_v63  ;;  %v3528_v22 = vmul.f32 %v3762_v50, %v3464_v1 }
 0x3a6   : > { %v3476_v29 = vmax.f32 %v3474_v39, 0.0  ;;  %v3477_v17 = vmax.f32 %v3475_v27, 0.0  ;;  %v3493_v21 = vmax.f32 %v3491_v47, 0.0  ;;  %v3494_v18 = vmax.f32 %v3492_v41, 0.0 }
 0x3a7   : > { %v3511_v30 = vmax.f32 %v3509_v42, 0.0  ;;  %v3512_v38 = vmax.f32 %v3510_v26, 0.0  ;;  %v3529_v59 = vmax.f32 %v3527_v25, 0.0  ;;  %v3530_v3 = vmax.f32 %v3528_v22, 0.0 }
 0x3a8   : > { %v3480_v6 = vrot.slane %v3476_v29, 4  ;;  %v3481_v33 = vrot.slane %v3477_v17, 4  ;;  %v3497_v40 = vrot.slane %v3493_v21, 4  ;;  %v3498_v43 = vrot.slane %v3494_v18, 4 }
 0x3a9   : > { %v3515_v37 = vrot.slane %v3511_v30, 4  ;;  %v3516_v48 = vrot.slane %v3512_v38, 4  ;;  %v3533_v49 = vrot.slane %v3529_v59, 4  ;;  %v3534_v44 = vrot.slane %v3530_v3, 4 }
 0x3aa   : > { %v3484_v51 = vadd.f32 %v3480_v6, %v3476_v29  ;;  %v3485_v52 = vadd.f32 %v3481_v33, %v3477_v17  ;;  %v3501_v0 = vadd.f32 %v3497_v40, %v3493_v21  ;;  %v3502_v53 = vadd.f32 %v3498_v43, %v3494_v18 }
 0x3ab   : > { %v3519_v54 = vadd.f32 %v3515_v37, %v3511_v30  ;;  %v3520_v46 = vadd.f32 %v3516_v48, %v3512_v38  ;;  %v3537_v45 = vadd.f32 %v3533_v49, %v3529_v59  ;;  %v3538_v55 = vadd.f32 %v3534_v44, %v3530_v3 }
 0x3ac   : > { %v3488_v56 = vcombine.low %v3484_v51, %v3485_v52  ;;  %v3505_v58 = vcombine.low %v3501_v0, %v3502_v53 }
 0x3ad   : > { %v3523_v60 = vcombine.low %v3519_v54, %v3520_v46  ;;  %v3541_v57 = vcombine.low %v3537_v45, %v3538_v55 }
 0x3ae   : > { %3490 = vst [vmem:[%s232_s6] sm:$0xff] %v3488_v56  ;;  %3696 = vst [vmem:[%s232_s6 + $0x8] sm:$0xff] %v3505_v58 }
 0x3af   : > { %3697 = vst [vmem:[%s232_s6 + $0x10] sm:$0xff] %v3523_v60  ;;  %3698 = vst [vmem:[%s232_s6 + $0x18] sm:$0xff] %v3541_v57 }
 0x3b0   : > { %3776 = shalt.err (!%p3773_p3)
}
 0x3b1   : > { %s3777_s14 = scalar_lea.hbm %s4370_s9, 512  ;;  %s3781_s17 = scalar_lea.hbm %s4421_s5, 1024 }
 0x3b2   : > { %p3778_p4 = scmp.ne.s32.totalorder %s4370_s9, %s3777_s14  ;;  %p3782_p9 = scmp.lt.s32.totalorder %s4370_s9, %s4421_s5 }
 0x3b3   : > { %p3783_p10 = scmp.lt.s32.totalorder %s3781_s17, %s3777_s14 }
 0x3b4   : > { %p3779_p7 = pnand %p3778_p4, %p3905_p5 }
 0x3b5   : > { %p3784_p11 = por %p3783_p10, %p3782_p9 }
 0x3b6   : > { %p3780_p8 = pneg %p3779_p7 }
 0x3b8   : > { %p3785_p12 = pnand %p3784_p11, %p3780_p8 }
 0x3ba   : > { %3788 = shalt.err (!%p3785_p12)
}
 0x3bb   : > { %s3835_s26 = smov 128   ;;  %s3836_s6 = smov 8  }
 0x3bc   : > { %3707 = dma.vmem_to_hbm [thread:$0]  (%p3905_p5), %s4372_s30, 512, %s4370_s9, %s4376_s22, %s3835_s26, %s3835_s26, %s3836_s6  }
 0x3bd PF: > { %p3713_p13 = scmp.ge.s32.totalorder %s3823_s21, 2  ;;  %s3574_s7 = sand.u32 1, %s3811_s18  }
 0x3be   : > { %s3575_s8 = scalar_lea.sflag [#allocation3], %s3574_s7 }
 0x3bf   : > { %p3710_p0 = pnand %p3713_p13, %p3909_p6 }
 0x3c1   : > { %p3711_p1 = pneg %p3710_p0 }
 0x3c3   : > { %3806 = dma.done.wait (%p3711_p1), %s3575_s8, 512  }
 0x3c4   : > { %3808 = vsyncadd (%p3711_p1), %s3575_s8, 4294966784  ;;  %p15_p2 = scmp.ge.s32.totalorder %s3892_s24, 4   ;;  %s4424_s18 = smov %s3815_s19 }
 0x3c5   : > { %s4425_s19 = smov %s3819_s20  ;;  %s4426_s20 = smov %s3903_s27 }
 0x3c6   : > { %s4427_s21 = smov %s3892_s24  ;;  %17 = sbr.rel (!%p15_p2) target bundleno = 3 (0x3), region = 95 }
 0x3cb   :  { %3580 = vsyncpa [#allocation3], 1 }
 0x3cc   :  { %3582 = vsyncpa [#allocation3 + $0x1], 1 }

</bundles_post_ra>
